<compile_context>
chip_gen: v6e
topology: v6e:2x2x1
jax: 0.10.0
libtpu: 0.0.40
codegen_flags: <defaults>
</compile_context>

<pallas_src>
import jax
import jax.numpy as jnp
from jax.experimental import pallas as pl
from jax.experimental.pallas import tpu as pltpu


def _round_up(n, m):
    return ((n + m - 1) // m) * m


def _rnn_kernel(x_ref, h0_ref,
                wih0_ref, whh0_ref, b0_ref,
                wih1_ref, whh1_ref, b1_ref,
                wfc_ref, bfc_ref,
                out_ref, hT_ref, h1seq_ref):
    """Whole-sequence 2-layer Elman RNN + FC head, single grid cell.

    x_ref   : (T, Bp, I)    time-major input (feature dim NOT padded to 128)
    h0_ref  : (2, Bp, Hp)   initial hidden states
    wih0    : (I, Hp)   whh0 : (Hp, Hp)   b0 : (1, Hp) == b_ih0 + b_hh0
    wih1    : (Hp, Hp)  whh1 : (Hp, Hp)   b1 : (1, Hp) == b_ih1 + b_hh1
    wfc     : (Hp, Cp)  bfc  : (1, Cp)
    out_ref : (T, Bp, Cp)   per-step FC outputs (time-major)
    hT_ref  : (2, Bp, Hp)   final hidden states
    h1seq_ref: (T*Bp, Hp)   VMEM scratch holding the layer-1 output sequence
    """
    T, Bp, I = x_ref.shape
    Hp = whh0_ref.shape[0]
    Cp = out_ref.shape[-1]

    # Hoisted layer-0 input projection: one MXU matmul over all timesteps,
    # fused bias added once (off the serial recurrence path).
    xp = x_ref[...].reshape(T * Bp, I)
    proj0 = (jnp.dot(xp, wih0_ref[...], preferred_element_type=jnp.float32)
             + b0_ref[...]).reshape(T, Bp, Hp)

    # Broadcast the layer-1 fused bias once (JAX does not CSE broadcast_in_dim in loops).
    b1 = jnp.broadcast_to(b1_ref[...], (Bp, Hp))

    h0 = h0_ref[0]
    h1 = h0_ref[1]

    # Fully unrolled recurrence (T is static at trace time).  Weight refs are
    # indexed at each dot (not hoisted into locals) so their vreg live ranges
    # stay per-step and the unrolled body fits the 64-vreg file.
    for t in range(T):
        # Layer-1 recurrent partial: depends only on h1[t-1], so issue it first
        # to overlap the layer-0 dot of this step (v7x MRB accumulates the two
        # layer-1 partials in the result buffer, no extra VPU add).
        p1 = jnp.dot(h1, whh1_ref[...], preferred_element_type=jnp.float32)
        # Layer 0: only the recurrent dot is on the critical path.
        h0 = jnp.tanh(proj0[t]
                      + jnp.dot(h0, whh0_ref[...], preferred_element_type=jnp.float32))
        # Layer 1: split dots (no lane-concat), add partials + fused bias.
        h1 = jnp.tanh(jnp.dot(h0, wih1_ref[...], preferred_element_type=jnp.float32)
                      + p1 + b1)
        # Cheap per-step vst into the sequence scratch (replaces Python list + concat).
        h1seq_ref[pl.ds(t * Bp, Bp), :] = h1

    # NOTE: padded batch rows of hT are nonzero (tanh of the fused biases
    # propagates through the recurrence).  Rows never mix and the wrapper
    # slices them off; do not reuse padded rows without masking.
    hT_ref[0] = h0
    hT_ref[1] = h1

    # FC head applied once to the whole (T*Bp, Hp) sequence -> one lane-dense store.
    out = (jnp.dot(h1seq_ref[...], wfc_ref[...], preferred_element_type=jnp.float32)
           + bfc_ref[...])
    out_ref[...] = out.reshape(T, Bp, Cp)


def prepare_rnn_params(params):
    """One-time parameter prep (transpose / pad / bias fusion). Run at model init,
    NOT per forward call."""
    (w_ih0, w_hh0, b_ih0, b_hh0,
     w_ih1, w_hh1, b_ih1, b_hh1,
     w_fc, b_fc) = params
    H = w_hh0.shape[0]
    C = w_fc.shape[0]
    Hp = _round_up(H, 128)
    Cp = _round_up(C, 128)

    def pad2(a, r, c):
        return jnp.pad(a, ((0, r - a.shape[0]), (0, c - a.shape[1])))

    def pad1(a, n):
        return jnp.pad(a, (0, n - a.shape[0]))[None, :]

    prepped = (
        pad2(w_ih0.T, w_ih0.shape[1], Hp),   # (I, Hp)   input feature dim left as-is
        pad2(w_hh0.T, Hp, Hp),               # (Hp, Hp)
        pad1(b_ih0 + b_hh0, Hp),             # (1, Hp)   fused bias, layer 0
        pad2(w_ih1.T, Hp, Hp),               # (Hp, Hp)
        pad2(w_hh1.T, Hp, Hp),               # (Hp, Hp)
        pad1(b_ih1 + b_hh1, Hp),             # (1, Hp)   fused bias, layer 1
        pad2(w_fc.T, Hp, Cp),                # (Hp, Cp)
        pad1(b_fc, Cp),                      # (1, Cp)
    )
    return jax.block_until_ready(prepped)


def make_rnn_forward(prepped, hidden_size, num_classes):
    """Returns a jitted forward(x, h) closed over the pre-padded parameters.
    Per-call work outside the kernel is only the transpose/pad of x and h."""
    (wih0_p, whh0_p, b0_p, wih1_p, whh1_p, b1_p, wfc_p, bfc_p) = prepped
    Hp = whh0_p.shape[0]
    Cp = wfc_p.shape[1]
    H, C = hidden_size, num_classes

    vmem = pl.BlockSpec(memory_space=pltpu.MemorySpace.VMEM)

    @jax.jit
    def forward(x, h):
        B, T, I = x.shape
        L = h.shape[0]
        Bp = _round_up(B, 8)

        # Time-major, batch-padded activations (tiny; feature dim NOT padded).
        x_tm = jnp.transpose(x, (1, 0, 2))                          # (T, B, I)
        x_p = jnp.pad(x_tm, ((0, 0), (0, Bp - B), (0, 0)))          # (T, Bp, I)
        h_p = jnp.pad(h, ((0, 0), (0, Bp - B), (0, Hp - H)))        # (L, Bp, Hp)

        out_p, hT_p = pl.pallas_call(
            _rnn_kernel,
            out_shape=(
                jax.ShapeDtypeStruct((T, Bp, Cp), jnp.float32),
                jax.ShapeDtypeStruct((L, Bp, Hp), jnp.float32),
            ),
            in_specs=[vmem] * 10,
            out_specs=(vmem, vmem),
            scratch_shapes=[pltpu.VMEM((T * Bp, Hp), jnp.float32)],
        )(x_p, h_p, wih0_p, whh0_p, b0_p, wih1_p, whh1_p, b1_p, wfc_p, bfc_p)

        # Slice off padding; PyTorch out.reshape(B*T, C) (batch_first) -> row b*T + t.
        out = jnp.transpose(out_p[:, :B, :C], (1, 0, 2)).reshape(B * T, C)
        hT = hT_p[:, :B, :H]
        return out, hT

    return forward


def _reference_forward(x, h, params):
    """Pure-JAX reference mirroring torch.nn.RNN(tanh) + Linear."""
    (w_ih0, w_hh0, b_ih0, b_hh0,
     w_ih1, w_hh1, b_ih1, b_hh1,
     w_fc, b_fc) = params
    B, T, _ = x.shape
    h0, h1 = h[0], h[1]
    outs = []
    for t in range(T):
        x_t = x[:, t, :]
        h0 = jnp.tanh(x_t @ w_ih0.T + b_ih0 + h0 @ w_hh0.T + b_hh0)
        h1 = jnp.tanh(h0 @ w_ih1.T + b_ih1 + h1 @ w_hh1.T + b_hh1)
        outs.append(h1)
    out_seq = jnp.stack(outs, axis=1)                               # (B, T, H)
    out = out_seq.reshape(B * T, -1) @ w_fc.T + b_fc
    return out, jnp.stack([h0, h1], axis=0)


def _init_params(key, input_size, hidden_size, num_classes):
    """Deterministic init, PyTorch-style U(-1/sqrt(H), 1/sqrt(H))."""
    bound = 1.0 / jnp.sqrt(jnp.float32(hidden_size))
    ks = jax.random.split(key, 10)
    u = lambda k, shp: jax.random.uniform(k, shp, jnp.float32, -bound, bound)
    return (
        u(ks[0], (hidden_size, input_size)),    # w_ih_l0
        u(ks[1], (hidden_size, hidden_size)),   # w_hh_l0
        u(ks[2], (hidden_size,)),               # b_ih_l0
        u(ks[3], (hidden_size,)),               # b_hh_l0
        u(ks[4], (hidden_size, hidden_size)),   # w_ih_l1
        u(ks[5], (hidden_size, hidden_size)),   # w_hh_l1
        u(ks[6], (hidden_size,)),               # b_ih_l1
        u(ks[7], (hidden_size,)),               # b_hh_l1
        u(ks[8], (num_classes, hidden_size)),   # fc.weight
        u(ks[9], (num_classes,)),               # fc.bias
    )


if __name__ == "__main__":
    # Small shapes consistent with the module (char-level RNN; vocab fixed in-script
    # instead of torch.load of char_to_idx).
    B, T = 2, 8
    input_size = 16          # vocabulary size
    hidden_size = 64
    num_layers = 2
    num_classes = input_size

    key = jax.random.PRNGKey(0)
    kx, kp = jax.random.split(key)
    x = jax.random.normal(kx, (B, T, input_size), jnp.float32)
    h = jnp.zeros((num_layers, B, hidden_size), jnp.float32)   # init_hidden
    params = _init_params(kp, input_size, hidden_size, num_classes)

    # One-time parameter prep + jitted forward closed over the prepped weights.
    prepped = prepare_rnn_params(params)
    forward = make_rnn_forward(prepped, hidden_size, num_classes)

    out, hT = jax.block_until_ready(forward(x, h))
    out_ref, hT_ref = _reference_forward(x, h, params)

    assert out.shape == (B * T, num_classes) and hT.shape == (num_layers, B, hidden_size)
    assert jnp.allclose(out, out_ref, atol=1e-4, rtol=1e-4)
    assert jnp.allclose(hT, hT_ref, atol=1e-4, rtol=1e-4)
    print("KERNEL_OK")
</pallas_src>

<mosaic_0001>
module attributes {stable_mosaic.version = 11 : i64} {
  func.func @_rnn_kernel(%arg0: memref<8x8x16xf32, #tpu.memory_space<vmem>>, %arg1: memref<2x8x128xf32, #tpu.memory_space<vmem>>, %arg2: memref<16x128xf32, #tpu.memory_space<vmem>>, %arg3: memref<128x128xf32, #tpu.memory_space<vmem>>, %arg4: memref<1x128xf32, #tpu.memory_space<vmem>>, %arg5: memref<128x128xf32, #tpu.memory_space<vmem>>, %arg6: memref<128x128xf32, #tpu.memory_space<vmem>>, %arg7: memref<1x128xf32, #tpu.memory_space<vmem>>, %arg8: memref<128x128xf32, #tpu.memory_space<vmem>>, %arg9: memref<1x128xf32, #tpu.memory_space<vmem>>, %arg10: memref<8x8x128xf32, #tpu.memory_space<vmem>>, %arg11: memref<2x8x128xf32, #tpu.memory_space<vmem>>, %arg12: memref<64x128xf32, #tpu.memory_space<vmem>>) attributes {dimension_semantics = [], scalar_prefetch = 0 : i64, scratch_operands = 1 : i64, tpu.core_type = #tpu.core_type<tc>} {
    %c0 = arith.constant 0 : index
    %c0_0 = arith.constant 0 : index
    %c0_1 = arith.constant 0 : index
    %0 = vector.load %arg0[%c0, %c0_0, %c0_1] : memref<8x8x16xf32, #tpu.memory_space<vmem>>, vector<8x8x16xf32>
    %1 = vector.shape_cast %0 : vector<8x8x16xf32> to vector<64x16xf32>
    %c0_2 = arith.constant 0 : index
    %c0_3 = arith.constant 0 : index
    %2 = vector.load %arg2[%c0_2, %c0_3] : memref<16x128xf32, #tpu.memory_space<vmem>>, vector<16x128xf32>
    %cst = arith.constant dense<0.000000e+00> : vector<64x128xf32>
    %3 = tpu.matmul %1, %2, %cst {dimension_numbers = #tpu.dot_dimension_numbers<[1], [0], [0], [1], [0, 0, 1, 1], [], []>} : vector<64x16xf32>, vector<16x128xf32>, vector<64x128xf32> -> vector<64x128xf32>
    %c0_4 = arith.constant 0 : index
    %c0_5 = arith.constant 0 : index
    %4 = vector.load %arg4[%c0_4, %c0_5] : memref<1x128xf32, #tpu.memory_space<vmem>>, vector<1x128xf32>
    %5 = vector.broadcast %4 : vector<1x128xf32> to vector<64x128xf32>
    %6 = arith.addf %3, %5 : vector<64x128xf32>
    %7 = vector.shape_cast %6 : vector<64x128xf32> to vector<8x8x128xf32>
    %c0_6 = arith.constant 0 : index
    %c0_7 = arith.constant 0 : index
    %8 = vector.load %arg7[%c0_6, %c0_7] : memref<1x128xf32, #tpu.memory_space<vmem>>, vector<1x128xf32>
    %9 = vector.shape_cast %8 : vector<1x128xf32> to vector<1x128xf32>
    %10 = vector.broadcast %9 : vector<1x128xf32> to vector<8x128xf32>
    %c0_8 = arith.constant 0 : index
    %c0_9 = arith.constant 0 : index
    %c0_10 = arith.constant 0 : index
    %11 = vector.load %arg1[%c0_8, %c0_9, %c0_10] : memref<2x8x128xf32, #tpu.memory_space<vmem>>, vector<1x8x128xf32>
    %12 = vector.shape_cast %11 : vector<1x8x128xf32> to vector<8x128xf32>
    %c1 = arith.constant 1 : index
    %c0_11 = arith.constant 0 : index
    %c0_12 = arith.constant 0 : index
    %13 = vector.load %arg1[%c1, %c0_11, %c0_12] : memref<2x8x128xf32, #tpu.memory_space<vmem>>, vector<1x8x128xf32>
    %14 = vector.shape_cast %13 : vector<1x8x128xf32> to vector<8x128xf32>
    %c0_13 = arith.constant 0 : index
    %c0_14 = arith.constant 0 : index
    %15 = vector.load %arg6[%c0_13, %c0_14] : memref<128x128xf32, #tpu.memory_space<vmem>>, vector<128x128xf32>
    %cst_15 = arith.constant dense<0.000000e+00> : vector<8x128xf32>
    %16 = tpu.matmul %14, %15, %cst_15 {dimension_numbers = #tpu.dot_dimension_numbers<[1], [0], [0], [1], [0, 0, 1, 1], [], []>} : vector<8x128xf32>, vector<128x128xf32>, vector<8x128xf32> -> vector<8x128xf32>
    %17 = vector.extract_strided_slice %7 {offsets = [0, 0, 0], sizes = [1, 8, 128], strides = [1, 1, 1]} : vector<8x8x128xf32> to vector<1x8x128xf32>
    %18 = vector.shape_cast %17 : vector<1x8x128xf32> to vector<8x128xf32>
    %c0_16 = arith.constant 0 : index
    %c0_17 = arith.constant 0 : index
    %19 = vector.load %arg3[%c0_16, %c0_17] : memref<128x128xf32, #tpu.memory_space<vmem>>, vector<128x128xf32>
    %cst_18 = arith.constant dense<0.000000e+00> : vector<8x128xf32>
    %20 = tpu.matmul %12, %19, %cst_18 {dimension_numbers = #tpu.dot_dimension_numbers<[1], [0], [0], [1], [0, 0, 1, 1], [], []>} : vector<8x128xf32>, vector<128x128xf32>, vector<8x128xf32> -> vector<8x128xf32>
    %21 = arith.addf %18, %20 : vector<8x128xf32>
    %22 = math.tanh %21 : vector<8x128xf32>
    %c0_19 = arith.constant 0 : index
    %c0_20 = arith.constant 0 : index
    %23 = vector.load %arg5[%c0_19, %c0_20] : memref<128x128xf32, #tpu.memory_space<vmem>>, vector<128x128xf32>
    %cst_21 = arith.constant dense<0.000000e+00> : vector<8x128xf32>
    %24 = tpu.matmul %22, %23, %cst_21 {dimension_numbers = #tpu.dot_dimension_numbers<[1], [0], [0], [1], [0, 0, 1, 1], [], []>} : vector<8x128xf32>, vector<128x128xf32>, vector<8x128xf32> -> vector<8x128xf32>
    %25 = arith.addf %24, %16 : vector<8x128xf32>
    %26 = arith.addf %25, %10 : vector<8x128xf32>
    %27 = math.tanh %26 : vector<8x128xf32>
    %c0_22 = arith.constant 0 : index
    %c0_23 = arith.constant 0 : index
    %28 = vector.load %arg12[%c0_22, %c0_23] : memref<64x128xf32, #tpu.memory_space<vmem>>, vector<8x128xf32>
    tpu.vector_store %arg12[%c0_22, %c0_23], %27 {strides = array<i32>} : memref<64x128xf32, #tpu.memory_space<vmem>>, vector<8x128xf32>,
    %c0_24 = arith.constant 0 : index
    %c0_25 = arith.constant 0 : index
    %29 = vector.load %arg6[%c0_24, %c0_25] : memref<128x128xf32, #tpu.memory_space<vmem>>, vector<128x128xf32>
    %cst_26 = arith.constant dense<0.000000e+00> : vector<8x128xf32>
    %30 = tpu.matmul %27, %29, %cst_26 {dimension_numbers = #tpu.dot_dimension_numbers<[1], [0], [0], [1], [0, 0, 1, 1], [], []>} : vector<8x128xf32>, vector<128x128xf32>, vector<8x128xf32> -> vector<8x128xf32>
    %31 = vector.extract_strided_slice %7 {offsets = [1, 0, 0], sizes = [1, 8, 128], strides = [1, 1, 1]} : vector<8x8x128xf32> to vector<1x8x128xf32>
    %32 = vector.shape_cast %31 : vector<1x8x128xf32> to vector<8x128xf32>
    %c0_27 = arith.constant 0 : index
    %c0_28 = arith.constant 0 : index
    %33 = vector.load %arg3[%c0_27, %c0_28] : memref<128x128xf32, #tpu.memory_space<vmem>>, vector<128x128xf32>
    %cst_29 = arith.constant dense<0.000000e+00> : vector<8x128xf32>
    %34 = tpu.matmul %22, %33, %cst_29 {dimension_numbers = #tpu.dot_dimension_numbers<[1], [0], [0], [1], [0, 0, 1, 1], [], []>} : vector<8x128xf32>, vector<128x128xf32>, vector<8x128xf32> -> vector<8x128xf32>
    %35 = arith.addf %32, %34 : vector<8x128xf32>
    %36 = math.tanh %35 : vector<8x128xf32>
    %c0_30 = arith.constant 0 : index
    %c0_31 = arith.constant 0 : index
    %37 = vector.load %arg5[%c0_30, %c0_31] : memref<128x128xf32, #tpu.memory_space<vmem>>, vector<128x128xf32>
    %cst_32 = arith.constant dense<0.000000e+00> : vector<8x128xf32>
    %38 = tpu.matmul %36, %37, %cst_32 {dimension_numbers = #tpu.dot_dimension_numbers<[1], [0], [0], [1], [0, 0, 1, 1], [], []>} : vector<8x128xf32>, vector<128x128xf32>, vector<8x128xf32> -> vector<8x128xf32>
    %39 = arith.addf %38, %30 : vector<8x128xf32>
    %40 = arith.addf %39, %10 : vector<8x128xf32>
    %41 = math.tanh %40 : vector<8x128xf32>
    %c8 = arith.constant 8 : index
    %c0_33 = arith.constant 0 : index
    %42 = vector.load %arg12[%c8, %c0_33] : memref<64x128xf32, #tpu.memory_space<vmem>>, vector<8x128xf32>
    tpu.vector_store %arg12[%c8, %c0_33], %41 {strides = array<i32>} : memref<64x128xf32, #tpu.memory_space<vmem>>, vector<8x128xf32>,
    %c0_34 = arith.constant 0 : index
    %c0_35 = arith.constant 0 : index
    %43 = vector.load %arg6[%c0_34, %c0_35] : memref<128x128xf32, #tpu.memory_space<vmem>>, vector<128x128xf32>
    %cst_36 = arith.constant dense<0.000000e+00> : vector<8x128xf32>
    %44 = tpu.matmul %41, %43, %cst_36 {dimension_numbers = #tpu.dot_dimension_numbers<[1], [0], [0], [1], [0, 0, 1, 1], [], []>} : vector<8x128xf32>, vector<128x128xf32>, vector<8x128xf32> -> vector<8x128xf32>
    %45 = vector.extract_strided_slice %7 {offsets = [2, 0, 0], sizes = [1, 8, 128], strides = [1, 1, 1]} : vector<8x8x128xf32> to vector<1x8x128xf32>
    %46 = vector.shape_cast %45 : vector<1x8x128xf32> to vector<8x128xf32>
    %c0_37 = arith.constant 0 : index
    %c0_38 = arith.constant 0 : index
    %47 = vector.load %arg3[%c0_37, %c0_38] : memref<128x128xf32, #tpu.memory_space<vmem>>, vector<128x128xf32>
    %cst_39 = arith.constant dense<0.000000e+00> : vector<8x128xf32>
    %48 = tpu.matmul %36, %47, %cst_39 {dimension_numbers = #tpu.dot_dimension_numbers<[1], [0], [0], [1], [0, 0, 1, 1], [], []>} : vector<8x128xf32>, vector<128x128xf32>, vector<8x128xf32> -> vector<8x128xf32>
    %49 = arith.addf %46, %48 : vector<8x128xf32>
    %50 = math.tanh %49 : vector<8x128xf32>
    %c0_40 = arith.constant 0 : index
    %c0_41 = arith.constant 0 : index
    %51 = vector.load %arg5[%c0_40, %c0_41] : memref<128x128xf32, #tpu.memory_space<vmem>>, vector<128x128xf32>
    %cst_42 = arith.constant dense<0.000000e+00> : vector<8x128xf32>
    %52 = tpu.matmul %50, %51, %cst_42 {dimension_numbers = #tpu.dot_dimension_numbers<[1], [0], [0], [1], [0, 0, 1, 1], [], []>} : vector<8x128xf32>, vector<128x128xf32>, vector<8x128xf32> -> vector<8x128xf32>
    %53 = arith.addf %52, %44 : vector<8x128xf32>
    %54 = arith.addf %53, %10 : vector<8x128xf32>
    %55 = math.tanh %54 : vector<8x128xf32>
    %c16 = arith.constant 16 : index
    %c0_43 = arith.constant 0 : index
    %56 = vector.load %arg12[%c16, %c0_43] : memref<64x128xf32, #tpu.memory_space<vmem>>, vector<8x128xf32>
    tpu.vector_store %arg12[%c16, %c0_43], %55 {strides = array<i32>} : memref<64x128xf32, #tpu.memory_space<vmem>>, vector<8x128xf32>,
    %c0_44 = arith.constant 0 : index
    %c0_45 = arith.constant 0 : index
    %57 = vector.load %arg6[%c0_44, %c0_45] : memref<128x128xf32, #tpu.memory_space<vmem>>, vector<128x128xf32>
    %cst_46 = arith.constant dense<0.000000e+00> : vector<8x128xf32>
    %58 = tpu.matmul %55, %57, %cst_46 {dimension_numbers = #tpu.dot_dimension_numbers<[1], [0], [0], [1], [0, 0, 1, 1], [], []>} : vector<8x128xf32>, vector<128x128xf32>, vector<8x128xf32> -> vector<8x128xf32>
    %59 = vector.extract_strided_slice %7 {offsets = [3, 0, 0], sizes = [1, 8, 128], strides = [1, 1, 1]} : vector<8x8x128xf32> to vector<1x8x128xf32>
    %60 = vector.shape_cast %59 : vector<1x8x128xf32> to vector<8x128xf32>
    %c0_47 = arith.constant 0 : index
    %c0_48 = arith.constant 0 : index
    %61 = vector.load %arg3[%c0_47, %c0_48] : memref<128x128xf32, #tpu.memory_space<vmem>>, vector<128x128xf32>
    %cst_49 = arith.constant dense<0.000000e+00> : vector<8x128xf32>
    %62 = tpu.matmul %50, %61, %cst_49 {dimension_numbers = #tpu.dot_dimension_numbers<[1], [0], [0], [1], [0, 0, 1, 1], [], []>} : vector<8x128xf32>, vector<128x128xf32>, vector<8x128xf32> -> vector<8x128xf32>
    %63 = arith.addf %60, %62 : vector<8x128xf32>
    %64 = math.tanh %63 : vector<8x128xf32>
    %c0_50 = arith.constant 0 : index
    %c0_51 = arith.constant 0 : index
    %65 = vector.load %arg5[%c0_50, %c0_51] : memref<128x128xf32, #tpu.memory_space<vmem>>, vector<128x128xf32>
    %cst_52 = arith.constant dense<0.000000e+00> : vector<8x128xf32>
    %66 = tpu.matmul %64, %65, %cst_52 {dimension_numbers = #tpu.dot_dimension_numbers<[1], [0], [0], [1], [0, 0, 1, 1], [], []>} : vector<8x128xf32>, vector<128x128xf32>, vector<8x128xf32> -> vector<8x128xf32>
    %67 = arith.addf %66, %58 : vector<8x128xf32>
    %68 = arith.addf %67, %10 : vector<8x128xf32>
    %69 = math.tanh %68 : vector<8x128xf32>
    %c24 = arith.constant 24 : index
    %c0_53 = arith.constant 0 : index
    %70 = vector.load %arg12[%c24, %c0_53] : memref<64x128xf32, #tpu.memory_space<vmem>>, vector<8x128xf32>
    tpu.vector_store %arg12[%c24, %c0_53], %69 {strides = array<i32>} : memref<64x128xf32, #tpu.memory_space<vmem>>, vector<8x128xf32>,
    %c0_54 = arith.constant 0 : index
    %c0_55 = arith.constant 0 : index
    %71 = vector.load %arg6[%c0_54, %c0_55] : memref<128x128xf32, #tpu.memory_space<vmem>>, vector<128x128xf32>
    %cst_56 = arith.constant dense<0.000000e+00> : vector<8x128xf32>
    %72 = tpu.matmul %69, %71, %cst_56 {dimension_numbers = #tpu.dot_dimension_numbers<[1], [0], [0], [1], [0, 0, 1, 1], [], []>} : vector<8x128xf32>, vector<128x128xf32>, vector<8x128xf32> -> vector<8x128xf32>
    %73 = vector.extract_strided_slice %7 {offsets = [4, 0, 0], sizes = [1, 8, 128], strides = [1, 1, 1]} : vector<8x8x128xf32> to vector<1x8x128xf32>
    %74 = vector.shape_cast %73 : vector<1x8x128xf32> to vector<8x128xf32>
    %c0_57 = arith.constant 0 : index
    %c0_58 = arith.constant 0 : index
    %75 = vector.load %arg3[%c0_57, %c0_58] : memref<128x128xf32, #tpu.memory_space<vmem>>, vector<128x128xf32>
    %cst_59 = arith.constant dense<0.000000e+00> : vector<8x128xf32>
    %76 = tpu.matmul %64, %75, %cst_59 {dimension_numbers = #tpu.dot_dimension_numbers<[1], [0], [0], [1], [0, 0, 1, 1], [], []>} : vector<8x128xf32>, vector<128x128xf32>, vector<8x128xf32> -> vector<8x128xf32>
    %77 = arith.addf %74, %76 : vector<8x128xf32>
    %78 = math.tanh %77 : vector<8x128xf32>
    %c0_60 = arith.constant 0 : index
    %c0_61 = arith.constant 0 : index
    %79 = vector.load %arg5[%c0_60, %c0_61] : memref<128x128xf32, #tpu.memory_space<vmem>>, vector<128x128xf32>
    %cst_62 = arith.constant dense<0.000000e+00> : vector<8x128xf32>
    %80 = tpu.matmul %78, %79, %cst_62 {dimension_numbers = #tpu.dot_dimension_numbers<[1], [0], [0], [1], [0, 0, 1, 1], [], []>} : vector<8x128xf32>, vector<128x128xf32>, vector<8x128xf32> -> vector<8x128xf32>
    %81 = arith.addf %80, %72 : vector<8x128xf32>
    %82 = arith.addf %81, %10 : vector<8x128xf32>
    %83 = math.tanh %82 : vector<8x128xf32>
    %c32 = arith.constant 32 : index
    %c0_63 = arith.constant 0 : index
    %84 = vector.load %arg12[%c32, %c0_63] : memref<64x128xf32, #tpu.memory_space<vmem>>, vector<8x128xf32>
    tpu.vector_store %arg12[%c32, %c0_63], %83 {strides = array<i32>} : memref<64x128xf32, #tpu.memory_space<vmem>>, vector<8x128xf32>,
    %c0_64 = arith.constant 0 : index
    %c0_65 = arith.constant 0 : index
    %85 = vector.load %arg6[%c0_64, %c0_65] : memref<128x128xf32, #tpu.memory_space<vmem>>, vector<128x128xf32>
    %cst_66 = arith.constant dense<0.000000e+00> : vector<8x128xf32>
    %86 = tpu.matmul %83, %85, %cst_66 {dimension_numbers = #tpu.dot_dimension_numbers<[1], [0], [0], [1], [0, 0, 1, 1], [], []>} : vector<8x128xf32>, vector<128x128xf32>, vector<8x128xf32> -> vector<8x128xf32>
    %87 = vector.extract_strided_slice %7 {offsets = [5, 0, 0], sizes = [1, 8, 128], strides = [1, 1, 1]} : vector<8x8x128xf32> to vector<1x8x128xf32>
    %88 = vector.shape_cast %87 : vector<1x8x128xf32> to vector<8x128xf32>
    %c0_67 = arith.constant 0 : index
    %c0_68 = arith.constant 0 : index
    %89 = vector.load %arg3[%c0_67, %c0_68] : memref<128x128xf32, #tpu.memory_space<vmem>>, vector<128x128xf32>
    %cst_69 = arith.constant dense<0.000000e+00> : vector<8x128xf32>
    %90 = tpu.matmul %78, %89, %cst_69 {dimension_numbers = #tpu.dot_dimension_numbers<[1], [0], [0], [1], [0, 0, 1, 1], [], []>} : vector<8x128xf32>, vector<128x128xf32>, vector<8x128xf32> -> vector<8x128xf32>
    %91 = arith.addf %88, %90 : vector<8x128xf32>
    %92 = math.tanh %91 : vector<8x128xf32>
    %c0_70 = arith.constant 0 : index
    %c0_71 = arith.constant 0 : index
    %93 = vector.load %arg5[%c0_70, %c0_71] : memref<128x128xf32, #tpu.memory_space<vmem>>, vector<128x128xf32>
    %cst_72 = arith.constant dense<0.000000e+00> : vector<8x128xf32>
    %94 = tpu.matmul %92, %93, %cst_72 {dimension_numbers = #tpu.dot_dimension_numbers<[1], [0], [0], [1], [0, 0, 1, 1], [], []>} : vector<8x128xf32>, vector<128x128xf32>, vector<8x128xf32> -> vector<8x128xf32>
    %95 = arith.addf %94, %86 : vector<8x128xf32>
    %96 = arith.addf %95, %10 : vector<8x128xf32>
    %97 = math.tanh %96 : vector<8x128xf32>
    %c40 = arith.constant 40 : index
    %c0_73 = arith.constant 0 : index
    %98 = vector.load %arg12[%c40, %c0_73] : memref<64x128xf32, #tpu.memory_space<vmem>>, vector<8x128xf32>
    tpu.vector_store %arg12[%c40, %c0_73], %97 {strides = array<i32>} : memref<64x128xf32, #tpu.memory_space<vmem>>, vector<8x128xf32>,
    %c0_74 = arith.constant 0 : index
    %c0_75 = arith.constant 0 : index
    %99 = vector.load %arg6[%c0_74, %c0_75] : memref<128x128xf32, #tpu.memory_space<vmem>>, vector<128x128xf32>
    %cst_76 = arith.constant dense<0.000000e+00> : vector<8x128xf32>
    %100 = tpu.matmul %97, %99, %cst_76 {dimension_numbers = #tpu.dot_dimension_numbers<[1], [0], [0], [1], [0, 0, 1, 1], [], []>} : vector<8x128xf32>, vector<128x128xf32>, vector<8x128xf32> -> vector<8x128xf32>
    %101 = vector.extract_strided_slice %7 {offsets = [6, 0, 0], sizes = [1, 8, 128], strides = [1, 1, 1]} : vector<8x8x128xf32> to vector<1x8x128xf32>
    %102 = vector.shape_cast %101 : vector<1x8x128xf32> to vector<8x128xf32>
    %c0_77 = arith.constant 0 : index
    %c0_78 = arith.constant 0 : index
    %103 = vector.load %arg3[%c0_77, %c0_78] : memref<128x128xf32, #tpu.memory_space<vmem>>, vector<128x128xf32>
    %cst_79 = arith.constant dense<0.000000e+00> : vector<8x128xf32>
    %104 = tpu.matmul %92, %103, %cst_79 {dimension_numbers = #tpu.dot_dimension_numbers<[1], [0], [0], [1], [0, 0, 1, 1], [], []>} : vector<8x128xf32>, vector<128x128xf32>, vector<8x128xf32> -> vector<8x128xf32>
    %105 = arith.addf %102, %104 : vector<8x128xf32>
    %106 = math.tanh %105 : vector<8x128xf32>
    %c0_80 = arith.constant 0 : index
    %c0_81 = arith.constant 0 : index
    %107 = vector.load %arg5[%c0_80, %c0_81] : memref<128x128xf32, #tpu.memory_space<vmem>>, vector<128x128xf32>
    %cst_82 = arith.constant dense<0.000000e+00> : vector<8x128xf32>
    %108 = tpu.matmul %106, %107, %cst_82 {dimension_numbers = #tpu.dot_dimension_numbers<[1], [0], [0], [1], [0, 0, 1, 1], [], []>} : vector<8x128xf32>, vector<128x128xf32>, vector<8x128xf32> -> vector<8x128xf32>
    %109 = arith.addf %108, %100 : vector<8x128xf32>
    %110 = arith.addf %109, %10 : vector<8x128xf32>
    %111 = math.tanh %110 : vector<8x128xf32>
    %c48 = arith.constant 48 : index
    %c0_83 = arith.constant 0 : index
    %112 = vector.load %arg12[%c48, %c0_83] : memref<64x128xf32, #tpu.memory_space<vmem>>, vector<8x128xf32>
    tpu.vector_store %arg12[%c48, %c0_83], %111 {strides = array<i32>} : memref<64x128xf32, #tpu.memory_space<vmem>>, vector<8x128xf32>,
    %c0_84 = arith.constant 0 : index
    %c0_85 = arith.constant 0 : index
    %113 = vector.load %arg6[%c0_84, %c0_85] : memref<128x128xf32, #tpu.memory_space<vmem>>, vector<128x128xf32>
    %cst_86 = arith.constant dense<0.000000e+00> : vector<8x128xf32>
    %114 = tpu.matmul %111, %113, %cst_86 {dimension_numbers = #tpu.dot_dimension_numbers<[1], [0], [0], [1], [0, 0, 1, 1], [], []>} : vector<8x128xf32>, vector<128x128xf32>, vector<8x128xf32> -> vector<8x128xf32>
    %115 = vector.extract_strided_slice %7 {offsets = [7, 0, 0], sizes = [1, 8, 128], strides = [1, 1, 1]} : vector<8x8x128xf32> to vector<1x8x128xf32>
    %116 = vector.shape_cast %115 : vector<1x8x128xf32> to vector<8x128xf32>
    %c0_87 = arith.constant 0 : index
    %c0_88 = arith.constant 0 : index
    %117 = vector.load %arg3[%c0_87, %c0_88] : memref<128x128xf32, #tpu.memory_space<vmem>>, vector<128x128xf32>
    %cst_89 = arith.constant dense<0.000000e+00> : vector<8x128xf32>
    %118 = tpu.matmul %106, %117, %cst_89 {dimension_numbers = #tpu.dot_dimension_numbers<[1], [0], [0], [1], [0, 0, 1, 1], [], []>} : vector<8x128xf32>, vector<128x128xf32>, vector<8x128xf32> -> vector<8x128xf32>
    %119 = arith.addf %116, %118 : vector<8x128xf32>
    %120 = math.tanh %119 : vector<8x128xf32>
    %c0_90 = arith.constant 0 : index
    %c0_91 = arith.constant 0 : index
    %121 = vector.load %arg5[%c0_90, %c0_91] : memref<128x128xf32, #tpu.memory_space<vmem>>, vector<128x128xf32>
    %cst_92 = arith.constant dense<0.000000e+00> : vector<8x128xf32>
    %122 = tpu.matmul %120, %121, %cst_92 {dimension_numbers = #tpu.dot_dimension_numbers<[1], [0], [0], [1], [0, 0, 1, 1], [], []>} : vector<8x128xf32>, vector<128x128xf32>, vector<8x128xf32> -> vector<8x128xf32>
    %123 = arith.addf %122, %114 : vector<8x128xf32>
    %124 = arith.addf %123, %10 : vector<8x128xf32>
    %125 = math.tanh %124 : vector<8x128xf32>
    %c56 = arith.constant 56 : index
    %c0_93 = arith.constant 0 : index
    %126 = vector.load %arg12[%c56, %c0_93] : memref<64x128xf32, #tpu.memory_space<vmem>>, vector<8x128xf32>
    tpu.vector_store %arg12[%c56, %c0_93], %125 {strides = array<i32>} : memref<64x128xf32, #tpu.memory_space<vmem>>, vector<8x128xf32>,
    %c0_94 = arith.constant 0 : index
    %c0_95 = arith.constant 0 : index
    %c0_96 = arith.constant 0 : index
    %127 = vector.load %arg11[%c0_94, %c0_95, %c0_96] : memref<2x8x128xf32, #tpu.memory_space<vmem>>, vector<1x8x128xf32>
    %128 = vector.shape_cast %127 : vector<1x8x128xf32> to vector<8x128xf32>
    %129 = vector.shape_cast %120 : vector<8x128xf32> to vector<1x8x128xf32>
    tpu.vector_store %arg11[%c0_94, %c0_95, %c0_96], %129 {strides = array<i32>} : memref<2x8x128xf32, #tpu.memory_space<vmem>>, vector<1x8x128xf32>,
    %c1_97 = arith.constant 1 : index
    %c0_98 = arith.constant 0 : index
    %c0_99 = arith.constant 0 : index
    %130 = vector.load %arg11[%c1_97, %c0_98, %c0_99] : memref<2x8x128xf32, #tpu.memory_space<vmem>>, vector<1x8x128xf32>
    %131 = vector.shape_cast %130 : vector<1x8x128xf32> to vector<8x128xf32>
    %132 = vector.shape_cast %125 : vector<8x128xf32> to vector<1x8x128xf32>
    tpu.vector_store %arg11[%c1_97, %c0_98, %c0_99], %132 {strides = array<i32>} : memref<2x8x128xf32, #tpu.memory_space<vmem>>, vector<1x8x128xf32>,
    %c0_100 = arith.constant 0 : index
    %c0_101 = arith.constant 0 : index
    %133 = vector.load %arg12[%c0_100, %c0_101] : memref<64x128xf32, #tpu.memory_space<vmem>>, vector<64x128xf32>
    %c0_102 = arith.constant 0 : index
    %c0_103 = arith.constant 0 : index
    %134 = vector.load %arg8[%c0_102, %c0_103] : memref<128x128xf32, #tpu.memory_space<vmem>>, vector<128x128xf32>
    %cst_104 = arith.constant dense<0.000000e+00> : vector<64x128xf32>
    %135 = tpu.matmul %133, %134, %cst_104 {dimension_numbers = #tpu.dot_dimension_numbers<[1], [0], [0], [1], [0, 0, 1, 1], [], []>} : vector<64x128xf32>, vector<128x128xf32>, vector<64x128xf32> -> vector<64x128xf32>
    %c0_105 = arith.constant 0 : index
    %c0_106 = arith.constant 0 : index
    %136 = vector.load %arg9[%c0_105, %c0_106] : memref<1x128xf32, #tpu.memory_space<vmem>>, vector<1x128xf32>
    %137 = vector.broadcast %136 : vector<1x128xf32> to vector<64x128xf32>
    %138 = arith.addf %135, %137 : vector<64x128xf32>
    %139 = vector.shape_cast %138 : vector<64x128xf32> to vector<8x8x128xf32>
    %c0_107 = arith.constant 0 : index
    %c0_108 = arith.constant 0 : index
    %c0_109 = arith.constant 0 : index
    %140 = vector.load %arg10[%c0_107, %c0_108, %c0_109] : memref<8x8x128xf32, #tpu.memory_space<vmem>>, vector<8x8x128xf32>
    tpu.vector_store %arg10[%c0_107, %c0_108, %c0_109], %139 {strides = array<i32>} : memref<8x8x128xf32, #tpu.memory_space<vmem>>, vector<8x8x128xf32>,
    return
  }
}

</mosaic_0001>

<bundles_post_ra>
// kernel: forward.1
= control target key start
LH: loop header
LB: loop body
LE: loop exit
PB: predicated region body
PF: predicated region fallthrough
CT: control target
= control target key end

     0   :  { %17 = vsyncpa [#allocation4], 0  ;;  %s5217_s0 = inlined_call_operand.vmem [shape: f32[8,8,16], index: 0, kind: input, shape index: {}]   ;;  %s5218_s1 = inlined_call_operand.vmem [shape: f32[2,8,128], index: 1, kind: input, shape index: {}]   ;;  %s5219_s2 = inlined_call_operand.vmem [shape: f32[16,128], index: 2, kind: input, shape index: {}]   ;;  %s5220_s3 = inlined_call_operand.hbm [shape: f32[128,128], index: 3, kind: input, shape index: {}]   ;;  %s5221_s4 = inlined_call_operand.vmem [shape: f32[1,128], index: 4, kind: input, shape index: {}]   ;;  %s5222_s5 = inlined_call_operand.hbm [shape: f32[128,128], index: 5, kind: input, shape index: {}]   ;;  %s5223_s6 = inlined_call_operand.hbm [shape: f32[128,128], index: 6, kind: input, shape index: {}]   ;;  %s5224_s7 = inlined_call_operand.vmem [shape: f32[1,128], index: 7, kind: input, shape index: {}]   ;;  %s5225_s8 = inlined_call_operand.vmem [shape: f32[128,128], index: 8, kind: input, shape index: {}]   ;;  %s5226_s9 = inlined_call_operand.vmem [shape: f32[1,128], index: 9, kind: input, shape index: {}]   ;;  %s5227_s10 = inlined_call_operand.vmem [shape: f32[8,8,128], index: 10, kind: output, shape index: {0}]   ;;  %s5228_s11 = inlined_call_operand.vmem [shape: f32[2,8,128], index: 11, kind: output, shape index: {1}]  }
   0x1   :  { %18 = vsyncpa [#allocation6], 0  ;;  %s3956_s17 = smov [#allocation5]   ;;  %s3957_s19 = smov [#allocation3]  }
   0x2   :  { %s44_s18 = sshll.u32 %s3956_s17, 4  ;;  %s30_s20 = sshll.u32 %s3957_s19, 4  ;;  %s45_s18 = int_to_ptr.vmem [resolvable:$true] %s44_s18  ;;  %s31_s20 = int_to_ptr.vmem [resolvable:$true] %s30_s20 }
   0x3   :  { %s3900_s21 = scalar_lea.vmem %s45_s18, 2048  ;;  %p3905_p1 = scmp.lt.s32.totalorder %s45_s18, %s45_s18 }
   0x4   :  { %p3901_p0 = scmp.ne.s32.totalorder %s45_s18, %s3900_s21  ;;  %p3906_p2 = scmp.lt.s32.totalorder %s3900_s21, %s3900_s21 }
   0x6   :  { %p3907_p3 = por %p3906_p2, %p3905_p1 }
   0x8   :  { %p3908_p4 = pnand %p3907_p3, %p3901_p0 }
   0xa   :  { %3911 = shalt.err (!%p3908_p4)
}
   0xb   :  { %s3958_s22 = smov 128   ;;  %s3959_s23 = smov 8  }
   0xc   :  { %50 = dma.hbm_to_vmem [thread:$0]  %s5222_s5, 2048, %s45_s18, [#allocation6], %s3958_s22, %s3958_s22, %s3959_s23  }
   0xd   :  { %s3920_s26 = scalar_lea.vmem %s31_s20, 2048  ;;  %p3925_p6 = scmp.lt.s32.totalorder %s31_s20, %s31_s20 }
   0xe   :  { %p3921_p5 = scmp.ne.s32.totalorder %s31_s20, %s3920_s26  ;;  %p3926_p7 = scmp.lt.s32.totalorder %s3920_s26, %s3920_s26 }
  0x10   :  { %p3927_p8 = por %p3926_p7, %p3925_p6 }
  0x12   :  { %p3928_p9 = pnand %p3927_p8, %p3921_p5 }
  0x14   :  { %3931 = shalt.err (!%p3928_p9)
}
  0x15   :  { %36 = dma.hbm_to_vmem [thread:$0]  %s5220_s3, 2048, %s31_s20, [#allocation4], %s3958_s22, %s3958_s22, %s3959_s23  }
  0x16   :  { %s3960_s29 = smov [#allocation7]  }
  0x17   :  { %s56_s30 = sshll.u32 %s3960_s29, 4  ;;  %s57_s30 = int_to_ptr.vmem [resolvable:$true] %s56_s30 }
  0x18   :  { %s3940_s12 = scalar_lea.vmem %s57_s30, 2048  ;;  %p3945_p11 = scmp.lt.s32.totalorder %s57_s30, %s57_s30 }
  0x19   :  { %p3941_p10 = scmp.ne.s32.totalorder %s57_s30, %s3940_s12  ;;  %p3946_p12 = scmp.lt.s32.totalorder %s3940_s12, %s3940_s12 }
  0x1b   :  { %p3947_p13 = por %p3946_p12, %p3945_p11 }
  0x1d   :  { %p3948_p0 = pnand %p3947_p13, %p3941_p10 }
  0x1f   :  { %3951 = shalt.err (!%p3948_p0)
}
  0x20   :  { %62 = dma.hbm_to_vmem [thread:$0]  %s5223_s6, 2048, %s57_s30, [#allocation6], %s3958_s22, %s3958_s22, %s3959_s23  }
  0x21   :  { %3952 = dma.done.wait [#allocation4], 2048  }
  0x22   :  { %3953 = vsyncadd [#allocation4], 4294965248 }
  0x23   :  { %3954 = dma.done.wait [#allocation6], 4096  }
  0x24   :  { %3955 = vsyncadd [#allocation6], 4294963200  ;;  %v3961_v0 = vmov 0.0   ;;  %vm3962_vm0 = vmmov 0   ;;  %v4035_v1 = vld [vmem:[#allocation7 + $0x78] sm:$0xff]  ;;  %v4037_v2 = vld [vmem:[#allocation7 + $0x70] sm:$0xff] }
  0x25   :  { %2967 = vmatprep.subr.mxu0 %v3961_v0  ;;  %2999 = vmatprep.mubr.msk.f32.mxu0 %vm3962_vm0, %v3961_v0  ;;  %v4041_v3 = vld [vmem:[#allocation7 + $0x68] sm:$0xff]  ;;  %v4045_v4 = vld [vmem:[#allocation7 + $0x60] sm:$0xff]  ;;  %v4049_v5 = vld [vmem:[#allocation7 + $0x58] sm:$0xff]  ;;  %vm95_vm1 = vcmask 130048  }
  0x26   :  { %2968 = vmatpush3.msra.mxu0 %v4035_v1  ;;  %v4053_v6 = vld [vmem:[#allocation7 + $0x50] sm:$0xff]  ;;  %v87_v7 = vld [vmem:[%s5219_s2 + $0x8] sm:$0xff]  ;;  %v86_v9 = vld [vmem:[%s5219_s2] sm:$0xff] }
  0x27   :  { %2969 = vmatprep.subr.mxu0 %v3961_v0  ;;  %v4060_v8 = vld [vmem:[#allocation7 + $0x48] sm:$0xff]  ;;  %2951 = vmatprep.subr.mxu1 %v87_v7  ;;  %v78_v10 = vld [vmem:[%s5217_s0] sm:$0xff]  ;;  %v4077_v13 = vld [vmem:[#allocation7 + $0x38] sm:$0xff] }
  0x28   :  { %2970 = vmatpush3.msra.mxu0 %v4037_v2  ;;  %2952 = vmatpush3.msra.mxu1 %v87_v7  ;;  %v4070_v11 = vld [vmem:[#allocation7 + $0x40] sm:$0xff]  ;;  %v79_v12 = vld [vmem:[%s5217_s0 + $0x8] sm:$0xff]  ;;  %v4083_v14 = vld [vmem:[#allocation7 + $0x30] sm:$0xff] }
  0x29   :  { %2971 = vmatprep.subr.mxu0 %v3961_v0  ;;  %2953 = vmatprep.subr.mxu1 %v86_v9  ;;  %v4088_v15 = vld [vmem:[#allocation7 + $0x28] sm:$0xff]  ;;  %v4092_v16 = vld [vmem:[#allocation7 + $0x20] sm:$0xff]  ;;  %v4096_v17 = vld [vmem:[#allocation7 + $0x18] sm:$0xff] }
  0x2a   :  { %2972 = vmatpush3.msra.mxu0 %v4041_v3  ;;  %2954 = vmatpush3.msra.mxu1 %v86_v9  ;;  %v4100_v18 = vld [vmem:[#allocation7 + $0x10] sm:$0xff]  ;;  %v4104_v19 = vld [vmem:[#allocation7 + $0x8] sm:$0xff]  ;;  %v4108_v20 = vld [vmem:[#allocation7] sm:$0xff] }
  0x2b   :  { %2973 = vmatprep.subr.mxu0 %v3961_v0  ;;  %2955 = vmatprep.mubr.msk.f32.mxu1 %vm95_vm1, %v78_v10  ;;  %v2506_v21 = vld [vmem:[%s5218_s1 + $0x8] sm:$0xff]  ;;  %v4115_v22 = vld [vmem:[#allocation3 + $0x78] sm:$0xff]  ;;  %v4119_v23 = vld [vmem:[#allocation3 + $0x70] sm:$0xff] }
  0x2c   :  { %2974 = vmatpush3.msra.mxu0 %v4045_v4  ;;  %2956 = vmatmul.mubr.msk.f32.vlgmr.msra.gmra.mxu1 %vm95_vm1, %v79_v12  ;;  %v4125_v24 = vld [vmem:[#allocation3 + $0x68] sm:$0xff]  ;;  %v4129_v25 = vld [vmem:[#allocation3 + $0x60] sm:$0xff]  ;;  %v4133_v26 = vld [vmem:[#allocation3 + $0x58] sm:$0xff] }
  0x2d   :  { %2975 = vmatprep.subr.mxu0 %v3961_v0  ;;  %3037 = vmatprep.subr.mxu1 %v3961_v0  ;;  %v4137_v27 = vld [vmem:[#allocation3 + $0x50] sm:$0xff]  ;;  %v4141_v28 = vld [vmem:[#allocation3 + $0x48] sm:$0xff]  ;;  %v4145_v29 = vld [vmem:[#allocation3 + $0x40] sm:$0xff] }
  0x2e   :  { %2976 = vmatpush3.msra.mxu0 %v4049_v5  ;;  %v4149_v30 = vld [vmem:[#allocation3 + $0x38] sm:$0xff]  ;;  %v4153_v31 = vld [vmem:[#allocation3 + $0x30] sm:$0xff]  ;;  %v4157_v32 = vld [vmem:[#allocation3 + $0x28] sm:$0xff] }
  0x2f   :  { %2977 = vmatprep.subr.mxu0 %v3961_v0  ;;  %v4161_v33 = vld [vmem:[#allocation3 + $0x20] sm:$0xff]  ;;  %v4165_v34 = vld [vmem:[#allocation3 + $0x18] sm:$0xff]  ;;  %v4169_v35 = vld [vmem:[#allocation3 + $0x10] sm:$0xff] }
  0x30   :  { %2978 = vmatpush3.msra.mxu0 %v4053_v6  ;;  %v4173_v36 = vld [vmem:[#allocation3 + $0x8] sm:$0xff]  ;;  %v4177_v37 = vld [vmem:[#allocation3] sm:$0xff]  ;;  %v4220_v39 = vld [vmem:[#allocation5 + $0x78] sm:$0xff] }
  0x31   :  { %2979 = vmatprep.subr.mxu0 %v3961_v0  ;;  %v232_v38 = vld [vmem:[%s5218_s1] sm:$0xff]  ;;  %v4222_v40 = vld [vmem:[#allocation5 + $0x70] sm:$0xff]  ;;  %3038 = vmatpush3.msra.mxu1 %v4220_v39  ;;  %v4226_v41 = vld [vmem:[#allocation5 + $0x68] sm:$0xff] }
  0x32   :  { %2980 = vmatpush3.msra.mxu0 %v4060_v8  ;;  %3039 = vmatprep.subr.mxu1 %v3961_v0  ;;  %v4230_v42 = vld [vmem:[#allocation5 + $0x60] sm:$0xff]  ;;  %v4234_v43 = vld [vmem:[#allocation5 + $0x58] sm:$0xff]  ;;  %v4238_v44 = vld [vmem:[#allocation5 + $0x50] sm:$0xff] }
  0x33   :  { %2981 = vmatprep.subr.mxu0 %v3961_v0  ;;  %3040 = vmatpush3.msra.mxu1 %v4222_v40  ;;  %v4242_v45 = vld [vmem:[#allocation5 + $0x48] sm:$0xff]  ;;  %v4246_v46 = vld [vmem:[#allocation5 + $0x40] sm:$0xff]  ;;  %v4252_v47 = vld [vmem:[#allocation5 + $0x38] sm:$0xff] }
  0x34   :  { %2982 = vmatpush3.msra.mxu0 %v4070_v11  ;;  %3041 = vmatprep.subr.mxu1 %v3961_v0  ;;  %v80_v48 = vld [vmem:[%s5217_s0 + $0x10] sm:$0xff]  ;;  %v81_v49 = vld [vmem:[%s5217_s0 + $0x18] sm:$0xff]  ;;  %v4266_v51 = vld [vmem:[#allocation5 + $0x28] sm:$0xff] }
  0x35   :  { %2983 = vmatprep.subr.mxu0 %v3961_v0  ;;  %3042 = vmatpush3.msra.mxu1 %v4226_v41  ;;  %v4263_v50 = vld [vmem:[#allocation5 + $0x30] sm:$0xff]  ;;  %v82_v52 = vld [vmem:[%s5217_s0 + $0x20] sm:$0xff]  ;;  %v83_v53 = vld [vmem:[%s5217_s0 + $0x28] sm:$0xff] }
  0x36   :  { %2984 = vmatpush3.msra.mxu0 %v4077_v13  ;;  %3043 = vmatprep.subr.mxu1 %v3961_v0  ;;  %v4277_v54 = vld [vmem:[#allocation5 + $0x20] sm:$0xff]  ;;  %v84_v55 = vld [vmem:[%s5217_s0 + $0x30] sm:$0xff]  ;;  %v4285_v56 = vld [vmem:[#allocation5 + $0x18] sm:$0xff] }
  0x37   :  { %2985 = vmatprep.subr.mxu0 %v3961_v0  ;;  %3044 = vmatpush3.msra.mxu1 %v4230_v42  ;;  %v85_v57 = vld [vmem:[%s5217_s0 + $0x38] sm:$0xff]  ;;  %v4293_v58 = vld [vmem:[#allocation5 + $0x10] sm:$0xff]  ;;  %v4298_v59 = vld [vmem:[#allocation5 + $0x8] sm:$0xff] }
  0x38   :  { %2986 = vmatpush3.msra.mxu0 %v4083_v14  ;;  %3045 = vmatprep.subr.mxu1 %v3961_v0  ;;  %v4304_v60 = vld [vmem:[#allocation5] sm:$0xff] }
  0x39   :  { %2987 = vmatprep.subr.mxu0 %v3961_v0  ;;  %3046 = vmatpush3.msra.mxu1 %v4234_v43  ;;  %v4317_v7 = vld [vmem:[%s5221_s4] ss:$0 sm:$0xff] }
  0x3a   :  { %2988 = vmatpush3.msra.mxu0 %v4088_v15  ;;  %3047 = vmatprep.subr.mxu1 %v3961_v0 }
  0x3b   :  { %2989 = vmatprep.subr.mxu0 %v3961_v0  ;;  %3048 = vmatpush3.msra.mxu1 %v4238_v44 }
  0x3c   :  { %2990 = vmatpush3.msra.mxu0 %v4092_v16  ;;  %3049 = vmatprep.subr.mxu1 %v3961_v0 }
  0x3d   :  { %2991 = vmatprep.subr.mxu0 %v3961_v0  ;;  %3050 = vmatpush3.msra.mxu1 %v4242_v45 }
  0x3e   :  { %2992 = vmatpush3.msra.mxu0 %v4096_v17  ;;  %3051 = vmatprep.subr.mxu1 %v3961_v0 }
  0x3f   :  { %2993 = vmatprep.subr.mxu0 %v3961_v0  ;;  %3052 = vmatpush3.msra.mxu1 %v4246_v46 }
  0x40   :  { %2994 = vmatpush3.msra.mxu0 %v4100_v18  ;;  %3053 = vmatprep.subr.mxu1 %v3961_v0 }
  0x41   :  { %2995 = vmatprep.subr.mxu0 %v3961_v0  ;;  %3054 = vmatpush3.msra.mxu1 %v4252_v47 }
  0x42   :  { %2996 = vmatpush3.msra.mxu0 %v4104_v19  ;;  %2958 = vmatprep.mubr.msk.f32.mxu1 %vm95_vm1, %v80_v48 }
  0x43   :  { %2997 = vmatprep.subr.mxu0 %v3961_v0  ;;  %3055 = vmatprep.subr.mxu1 %v3961_v0 }
  0x44   :  { %2998 = vmatpush3.msra.mxu0 %v4108_v20  ;;  %2959 = vmatmul.mubr.msk.f32.gmra.mxu1 %vm95_vm1, %v81_v49 }
  0x45   :  { %3000 = vmatmul.mubr.f32.vlgmr.msra.gmra.mxu0 %v2506_v21  ;;  %3002 = vmatprep.subr.mxu0 %v3961_v0 }
  0x46   :  { %3003 = vmatpush3.msra.mxu0 %v4115_v22  ;;  %3034 = vmatprep.mubr.msk.f32.mxu0 %vm3962_vm0, %v3961_v0 }
  0x47   :  { %3004 = vmatprep.subr.mxu0 %v3961_v0  ;;  %3056 = vmatpush3.msra.mxu1 %v4263_v50 }
  0x48   :  { %3005 = vmatpush3.msra.mxu0 %v4119_v23  ;;  %2961 = vmatprep.mubr.msk.f32.mxu1 %vm95_vm1, %v82_v52 }
  0x49   :  { %3006 = vmatprep.subr.mxu0 %v3961_v0  ;;  %3057 = vmatprep.subr.mxu1 %v3961_v0 }
  0x4a   :  { %3007 = vmatpush3.msra.mxu0 %v4125_v24  ;;  %3058 = vmatpush3.msra.mxu1 %v4266_v51 }
  0x4b   :  { %3008 = vmatprep.subr.mxu0 %v3961_v0  ;;  %3059 = vmatprep.subr.mxu1 %v3961_v0 }
  0x4c   :  { %3009 = vmatpush3.msra.mxu0 %v4129_v25  ;;  %2962 = vmatmul.mubr.msk.f32.gmra.mxu1 %vm95_vm1, %v83_v53 }
  0x4d   :  { %3010 = vmatprep.subr.mxu0 %v3961_v0  ;;  %3060 = vmatpush3.msra.mxu1 %v4277_v54 }
  0x4e   :  { %3011 = vmatpush3.msra.mxu0 %v4133_v26  ;;  %2964 = vmatprep.mubr.msk.f32.mxu1 %vm95_vm1, %v84_v55 }
  0x4f   :  { %3012 = vmatprep.subr.mxu0 %v3961_v0  ;;  %3061 = vmatprep.subr.mxu1 %v3961_v0 }
  0x50   :  { %3013 = vmatpush3.msra.mxu0 %v4137_v27  ;;  %3062 = vmatpush3.msra.mxu1 %v4285_v56 }
  0x51   :  { %3014 = vmatprep.subr.mxu0 %v3961_v0  ;;  %3063 = vmatprep.subr.mxu1 %v3961_v0 }
  0x52   :  { %3015 = vmatpush3.msra.mxu0 %v4141_v28  ;;  %2965 = vmatmul.mubr.msk.f32.gmra.mxu1 %vm95_vm1, %v85_v57 }
  0x53   :  { %3016 = vmatprep.subr.mxu0 %v3961_v0  ;;  %3064 = vmatpush3.msra.mxu1 %v4293_v58 }
  0x54   :  { %3017 = vmatpush3.msra.mxu0 %v4145_v29  ;;  %3069 = vmatprep.mubr.msk.f32.mxu1 %vm3962_vm0, %v3961_v0 }
  0x55   :  { %3018 = vmatprep.subr.mxu0 %v3961_v0  ;;  %3065 = vmatprep.subr.mxu1 %v3961_v0 }
  0x56   :  { %3019 = vmatpush3.msra.mxu0 %v4149_v30  ;;  %3066 = vmatpush3.msra.mxu1 %v4298_v59 }
  0x57   :  { %3020 = vmatprep.subr.mxu0 %v3961_v0  ;;  %3067 = vmatprep.subr.mxu1 %v3961_v0 }
  0x58   :  { %3021 = vmatpush3.msra.mxu0 %v4153_v31  ;;  %3068 = vmatpush3.msra.mxu1 %v4304_v60 }
  0x59   :  { %3022 = vmatprep.subr.mxu0 %v3961_v0  ;;  %3107 = vmatprep.subr.mxu1 %v3961_v0 }
  0x5a   :  { %3023 = vmatpush3.msra.mxu0 %v4157_v32 }
  0x5b   :  { %3024 = vmatprep.subr.mxu0 %v3961_v0 }
  0x5c   :  { %3025 = vmatpush3.msra.mxu0 %v4161_v33 }
  0x5d   :  { %3026 = vmatprep.subr.mxu0 %v3961_v0 }
  0x5e   :  { %3027 = vmatpush3.msra.mxu0 %v4165_v34 }
  0x5f   :  { %3028 = vmatprep.subr.mxu0 %v3961_v0 }
  0x60   :  { %3029 = vmatpush3.msra.mxu0 %v4169_v35 }
  0x61   :  { %3030 = vmatprep.subr.mxu0 %v3961_v0 }
  0x62   :  { %3031 = vmatpush3.msra.mxu0 %v4173_v36 }
  0x63   :  { %3032 = vmatprep.subr.mxu0 %v3961_v0 }
  0x64   :  { %3033 = vmatpush3.msra.mxu0 %v4177_v37 }
  0x65   :  { %3035 = vmatmul.mubr.f32.vlgmr.msra.gmra.mxu0 %v232_v38  ;;  %3072 = vmatprep.subr.mxu0 %v3961_v0 }
  0x66   :  { %3073 = vmatpush3.msra.mxu0 %v4035_v1  ;;  %3104 = vmatprep.mubr.msk.f32.mxu0 %vm3962_vm0, %v3961_v0 }
  0x67   :  { %3074 = vmatprep.subr.mxu0 %v3961_v0 }
  0x68   :  { %3075 = vmatpush3.msra.mxu0 %v4037_v2 }
  0x69   :  { %3076 = vmatprep.subr.mxu0 %v3961_v0 }
  0x6a   :  { %3077 = vmatpush3.msra.mxu0 %v4041_v3 }
  0x6b   :  { %3078 = vmatprep.subr.mxu0 %v3961_v0 }
  0x6c   :  { %3079 = vmatpush3.msra.mxu0 %v4045_v4 }
  0x6d   :  { %3080 = vmatprep.subr.mxu0 %v3961_v0 }
  0x6e   :  { %3081 = vmatpush3.msra.mxu0 %v4049_v5 }
  0x6f   :  { %3082 = vmatprep.subr.mxu0 %v3961_v0 }
  0x70   :  { %3083 = vmatpush3.msra.mxu0 %v4053_v6 }
  0x71   :  { %3084 = vmatprep.subr.mxu0 %v3961_v0 }
  0x72   :  { %3085 = vmatpush3.msra.mxu0 %v4060_v8 }
  0x73   :  { %3086 = vmatprep.subr.mxu0 %v3961_v0 }
  0x74   :  { %3087 = vmatpush3.msra.mxu0 %v4070_v11 }
  0x75   :  { %3088 = vmatprep.subr.mxu0 %v3961_v0 }
  0x76   :  { %3089 = vmatpush3.msra.mxu0 %v4077_v13 }
  0x77   :  { %3090 = vmatprep.subr.mxu0 %v3961_v0 }
  0x78   :  { %3091 = vmatpush3.msra.mxu0 %v4083_v14 }
  0x79   :  { %3092 = vmatprep.subr.mxu0 %v3961_v0 }
  0x7a   :  { %3093 = vmatpush3.msra.mxu0 %v4088_v15 }
  0x7b   :  { %3094 = vmatprep.subr.mxu0 %v3961_v0 }
  0x7c   :  { %3095 = vmatpush3.msra.mxu0 %v4092_v16 }
  0x7d   :  { %3096 = vmatprep.subr.mxu0 %v3961_v0 }
  0x7e   :  { %3097 = vmatpush3.msra.mxu0 %v4096_v17 }
  0x7f   :  { %3098 = vmatprep.subr.mxu0 %v3961_v0 }
  0x80   :  { %3099 = vmatpush3.msra.mxu0 %v4100_v18 }
  0x81   :  { %3100 = vmatprep.subr.mxu0 %v3961_v0 }
  0x82   :  { %3101 = vmatpush3.msra.mxu0 %v4104_v19 }
  0x83   :  { %3102 = vmatprep.subr.mxu0 %v3961_v0 }
  0x84   :  { %3103 = vmatpush3.msra.mxu0 %v4108_v20 }
  0x85   :  { %3142 = vmatprep.subr.mxu0 %v3961_v0 }
  0xec   :  { %v4312_v63 = vpop.f32.mrf.mxu1 }
  0xee   :  { %v186_v9 = vpop.f32.mrf.mxu1 }
  0xef   :  { %v187_v10 = vadd.f32 %v4317_v7, %v186_v9 }
 0x105   :  { %v4310_v61 = vpop.f32.mrf.mxu0 }
 0x107   :  { %v3001_v62 = vpop.f32.mrf.mxu0 }
 0x125   :  { %v403_v12 = vpop.f32.mrf.mxu0 }
 0x126   :  { %v407_v21 = vadd.f32 %v403_v12, %v187_v10 }
 0x127   :  { %v3036_v38 = vpop.f32.mrf.mxu0 }
 0x128   :  { %3858 = vtanh.f32 %v407_v21 }
 0x135   :  { %v3859_v48 = vpop.eup %3858 }
 0x136   :  { %3070 = vmatmul.mubr.f32.vlgmr.msra.gmra.mxu1 %v3859_v48 }
 0x137   :  { %3108 = vmatpush3.msra.mxu1 %v4115_v22  ;;  %3139 = vmatprep.mubr.msk.f32.mxu1 %vm3962_vm0, %v3961_v0 }
 0x138   :  { %3109 = vmatprep.subr.mxu1 %v3961_v0 }
 0x139   :  { %3110 = vmatpush3.msra.mxu1 %v4119_v23 }
 0x13a   :  { %3111 = vmatprep.subr.mxu1 %v3961_v0 }
 0x13b   :  { %3112 = vmatpush3.msra.mxu1 %v4125_v24 }
 0x13c   :  { %3113 = vmatprep.subr.mxu1 %v3961_v0 }
 0x13d   :  { %3114 = vmatpush3.msra.mxu1 %v4129_v25 }
 0x13e   :  { %3115 = vmatprep.subr.mxu1 %v3961_v0 }
 0x13f   :  { %3116 = vmatpush3.msra.mxu1 %v4133_v26 }
 0x140   :  { %3117 = vmatprep.subr.mxu1 %v3961_v0 }
 0x141   :  { %3118 = vmatpush3.msra.mxu1 %v4137_v27 }
 0x142   :  { %3119 = vmatprep.subr.mxu1 %v3961_v0 }
 0x143   :  { %3120 = vmatpush3.msra.mxu1 %v4141_v28 }
 0x144   :  { %3121 = vmatprep.subr.mxu1 %v3961_v0 }
 0x145   :  { %3122 = vmatpush3.msra.mxu1 %v4145_v29 }
 0x146   :  { %3123 = vmatprep.subr.mxu1 %v3961_v0 }
 0x147   :  { %3124 = vmatpush3.msra.mxu1 %v4149_v30 }
 0x148   :  { %3125 = vmatprep.subr.mxu1 %v3961_v0 }
 0x149   :  { %3126 = vmatpush3.msra.mxu1 %v4153_v31 }
 0x14a   :  { %3127 = vmatprep.subr.mxu1 %v3961_v0 }
 0x14b   :  { %3128 = vmatpush3.msra.mxu1 %v4157_v32 }
 0x14c   :  { %3129 = vmatprep.subr.mxu1 %v3961_v0 }
 0x14d   :  { %3130 = vmatpush3.msra.mxu1 %v4161_v33 }
 0x14e   :  { %3131 = vmatprep.subr.mxu1 %v3961_v0 }
 0x14f   :  { %3132 = vmatpush3.msra.mxu1 %v4165_v34 }
 0x150   :  { %3133 = vmatprep.subr.mxu1 %v3961_v0 }
 0x151   :  { %3134 = vmatpush3.msra.mxu1 %v4169_v35 }
 0x152   :  { %3135 = vmatprep.subr.mxu1 %v3961_v0 }
 0x153   :  { %3136 = vmatpush3.msra.mxu1 %v4173_v36 }
 0x154   :  { %3137 = vmatprep.subr.mxu1 %v3961_v0 }
 0x155   :  { %3138 = vmatpush3.msra.mxu1 %v4177_v37 }
 0x156   :  { %3140 = vmatmul.mubr.f32.vlgmr.msra.gmra.mxu1 %v3859_v48  ;;  %3177 = vmatprep.subr.mxu1 %v3961_v0 }
 0x157   :  { %3178 = vmatpush3.msra.mxu1 %v4035_v1  ;;  %3209 = vmatprep.mubr.msk.f32.mxu1 %vm3962_vm0, %v3961_v0  ;;  %v4388_v1 = vpop.f32.mrf.mxu1 }
 0x158   :  { %3179 = vmatprep.subr.mxu1 %v3961_v0 }
 0x159   :  { %3180 = vmatpush3.msra.mxu1 %v4037_v2  ;;  %v4390_v2 = vpop.f32.mrf.mxu1 }
 0x15a   :  { %3181 = vmatprep.subr.mxu1 %v3961_v0  ;;  %v197_v9 = vadd.f32 %v4317_v7, %v4390_v2 }
 0x15b   :  { %3182 = vmatpush3.msra.mxu1 %v4041_v3  ;;  %v4392_v3 = vpop.f32.mrf.mxu1 }
 0x15c   :  { %3183 = vmatprep.subr.mxu1 %v3961_v0 }
 0x15d   :  { %3184 = vmatpush3.msra.mxu1 %v4045_v4  ;;  %v4394_v4 = vpop.f32.mrf.mxu1 }
 0x15e   :  { %3185 = vmatprep.subr.mxu1 %v3961_v0 }
 0x15f   :  { %3186 = vmatpush3.msra.mxu1 %v4049_v5  ;;  %v4396_v5 = vpop.f32.mrf.mxu1 }
 0x160   :  { %3187 = vmatprep.subr.mxu1 %v3961_v0 }
 0x161   :  { %3188 = vmatpush3.msra.mxu1 %v4053_v6  ;;  %v4398_v6 = vpop.f32.mrf.mxu1 }
 0x162   :  { %3189 = vmatprep.subr.mxu1 %v3961_v0 }
 0x163   :  { %3190 = vmatpush3.msra.mxu1 %v4060_v8  ;;  %v4403_v8 = vld [vmem:[%s5224_s7] ss:$0 sm:$0xff] }
 0x164   :  { %3191 = vmatprep.subr.mxu1 %v3961_v0 }
 0x165   :  { %3192 = vmatpush3.msra.mxu1 %v4070_v11 }
 0x166   :  { %3193 = vmatprep.subr.mxu1 %v3961_v0 }
 0x167   :  { %3194 = vmatpush3.msra.mxu1 %v4077_v13 }
 0x168   :  { %3195 = vmatprep.subr.mxu1 %v3961_v0 }
 0x169   :  { %3196 = vmatpush3.msra.mxu1 %v4083_v14 }
 0x16a   :  { %3197 = vmatprep.subr.mxu1 %v3961_v0 }
 0x16b   :  { %3198 = vmatpush3.msra.mxu1 %v4088_v15 }
 0x16c   :  { %3199 = vmatprep.subr.mxu1 %v3961_v0 }
 0x16d   :  { %3200 = vmatpush3.msra.mxu1 %v4092_v16 }
 0x16e   :  { %3201 = vmatprep.subr.mxu1 %v3961_v0 }
 0x16f   :  { %3202 = vmatpush3.msra.mxu1 %v4096_v17  ;;  %v192_v17 = vadd.f32 %v4312_v63, %v4317_v7 }
 0x170   :  { %3203 = vmatprep.subr.mxu1 %v3961_v0 }
 0x171   :  { %3204 = vmatpush3.msra.mxu1 %v4100_v18 }
 0x172   :  { %3205 = vmatprep.subr.mxu1 %v3961_v0 }
 0x173   :  { %3206 = vmatpush3.msra.mxu1 %v4104_v19 }
 0x174   :  { %3207 = vmatprep.subr.mxu1 %v3961_v0 }
 0x175   :  { %3208 = vmatpush3.msra.mxu1 %v4108_v20 }
 0x176   :  { %3247 = vmatprep.subr.mxu1 %v3961_v0 }
 0x1f6   :  { %v491_v11 = vpop.f32.mrf.mxu1 }
 0x1f7   :  { %v492_v13 = vadd.f32 %v491_v11, %v4310_v61 }
 0x1f8   :  { %v3071_v14 = vpop.f32.mrf.mxu1 }
 0x1f9   :  { %v495_v15 = vadd.f32 %v4403_v8, %v492_v13 }
 0x1fb   :  { %3860 = vtanh.f32 %v495_v15 }
 0x208   :  { %v4407_v16 = vpop.eup %3860 }
 0x209   :  { %3105 = vmatmul.mubr.f32.vlgmr.msra.gmra.mxu0 %v4407_v16 }
 0x20a   :  { %3143 = vmatpush3.msra.mxu0 %v4220_v39  ;;  %3174 = vmatprep.mubr.msk.f32.mxu0 %vm3962_vm0, %v3961_v0 }
 0x20b   :  { %3144 = vmatprep.subr.mxu0 %v3961_v0 }
 0x20c   :  { %3145 = vmatpush3.msra.mxu0 %v4222_v40 }
 0x20d   :  { %3146 = vmatprep.subr.mxu0 %v3961_v0 }
 0x20e   :  { %3147 = vmatpush3.msra.mxu0 %v4226_v41 }
 0x20f   :  { %3148 = vmatprep.subr.mxu0 %v3961_v0 }
 0x210   :  { %3149 = vmatpush3.msra.mxu0 %v4230_v42 }
 0x211   :  { %3150 = vmatprep.subr.mxu0 %v3961_v0 }
 0x212   :  { %3151 = vmatpush3.msra.mxu0 %v4234_v43 }
 0x213   :  { %3152 = vmatprep.subr.mxu0 %v3961_v0 }
 0x214   :  { %3153 = vmatpush3.msra.mxu0 %v4238_v44 }
 0x215   :  { %3154 = vmatprep.subr.mxu0 %v3961_v0 }
 0x216   :  { %v666_v18 = vpop.f32.mrf.mxu1  ;;  %3155 = vmatpush3.msra.mxu0 %v4242_v45 }
 0x217   :  { %v670_v19 = vadd.f32 %v666_v18, %v192_v17  ;;  %3156 = vmatprep.subr.mxu0 %v3961_v0  ;;  %v4742_v18 = vld [vmem:[#allocation3 + $0x18] sm:$0xff] }
 0x218   :  { %v3141_v20 = vpop.f32.mrf.mxu1  ;;  %3157 = vmatpush3.msra.mxu0 %v4246_v46 }
 0x219   :  { %3158 = vmatprep.subr.mxu0 %v3961_v0  ;;  %3862 = vtanh.f32 %v670_v19  ;;  %v4746_v19 = vld [vmem:[#allocation3 + $0x10] sm:$0xff]  ;;  %v4750_v20 = vld [vmem:[#allocation3 + $0x8] sm:$0xff] }
 0x21a   :  { %3159 = vmatpush3.msra.mxu0 %v4252_v47 }
 0x21b   :  { %3160 = vmatprep.subr.mxu0 %v3961_v0 }
 0x21c   :  { %3161 = vmatpush3.msra.mxu0 %v4263_v50 }
 0x21d   :  { %3162 = vmatprep.subr.mxu0 %v3961_v0 }
 0x21e   :  { %3163 = vmatpush3.msra.mxu0 %v4266_v51 }
 0x21f   :  { %3164 = vmatprep.subr.mxu0 %v3961_v0 }
 0x220   :  { %3165 = vmatpush3.msra.mxu0 %v4277_v54 }
 0x221   :  { %3166 = vmatprep.subr.mxu0 %v3961_v0 }
 0x222   :  { %3167 = vmatpush3.msra.mxu0 %v4285_v56 }
 0x223   :  { %3168 = vmatprep.subr.mxu0 %v3961_v0 }
 0x224   :  { %3169 = vmatpush3.msra.mxu0 %v4293_v58 }
 0x225   :  { %3170 = vmatprep.subr.mxu0 %v3961_v0 }
 0x226   :  { %3171 = vmatpush3.msra.mxu0 %v4298_v59  ;;  %v3863_v49 = vpop.eup %3862 }
 0x227   :  { %3172 = vmatprep.subr.mxu0 %v3961_v0 }
 0x228   :  { %3173 = vmatpush3.msra.mxu0 %v4304_v60 }
 0x229   :  { %3175 = vmatmul.mubr.f32.vlgmr.msra.gmra.mxu0 %v3863_v49  ;;  %3212 = vmatprep.subr.mxu0 %v3961_v0 }
 0x22a   :  { %3213 = vmatpush3.msra.mxu0 %v4115_v22  ;;  %3244 = vmatprep.mubr.msk.f32.mxu0 %vm3962_vm0, %v3961_v0 }
 0x22b   :  { %3214 = vmatprep.subr.mxu0 %v3961_v0 }
 0x22c   :  { %3215 = vmatpush3.msra.mxu0 %v4119_v23 }
 0x22d   :  { %3216 = vmatprep.subr.mxu0 %v3961_v0 }
 0x22e   :  { %3217 = vmatpush3.msra.mxu0 %v4125_v24 }
 0x22f   :  { %3218 = vmatprep.subr.mxu0 %v3961_v0 }
 0x230   :  { %3219 = vmatpush3.msra.mxu0 %v4129_v25 }
 0x231   :  { %3220 = vmatprep.subr.mxu0 %v3961_v0 }
 0x232   :  { %3221 = vmatpush3.msra.mxu0 %v4133_v26 }
 0x233   :  { %3222 = vmatprep.subr.mxu0 %v3961_v0 }
 0x234   :  { %3223 = vmatpush3.msra.mxu0 %v4137_v27 }
 0x235   :  { %3224 = vmatprep.subr.mxu0 %v3961_v0 }
 0x236   :  { %3225 = vmatpush3.msra.mxu0 %v4141_v28 }
 0x237   :  { %3226 = vmatprep.subr.mxu0 %v3961_v0 }
 0x238   :  { %3227 = vmatpush3.msra.mxu0 %v4145_v29 }
 0x239   :  { %3228 = vmatprep.subr.mxu0 %v3961_v0 }
 0x23a   :  { %3229 = vmatpush3.msra.mxu0 %v4149_v30 }
 0x23b   :  { %3230 = vmatprep.subr.mxu0 %v3961_v0 }
 0x23c   :  { %3231 = vmatpush3.msra.mxu0 %v4153_v31 }
 0x23d   :  { %3232 = vmatprep.subr.mxu0 %v3961_v0 }
 0x23e   :  { %3233 = vmatpush3.msra.mxu0 %v4157_v32 }
 0x23f   :  { %3234 = vmatprep.subr.mxu0 %v3961_v0 }
 0x240   :  { %3235 = vmatpush3.msra.mxu0 %v4161_v33 }
 0x241   :  { %3236 = vmatprep.subr.mxu0 %v3961_v0 }
 0x242   :  { %3237 = vmatpush3.msra.mxu0 %v4165_v34 }
 0x243   :  { %3238 = vmatprep.subr.mxu0 %v3961_v0 }
 0x244   :  { %3239 = vmatpush3.msra.mxu0 %v4169_v35 }
 0x245   :  { %3240 = vmatprep.subr.mxu0 %v3961_v0 }
 0x246   :  { %3241 = vmatpush3.msra.mxu0 %v4173_v36 }
 0x247   :  { %3242 = vmatprep.subr.mxu0 %v3961_v0 }
 0x248   :  { %3243 = vmatpush3.msra.mxu0 %v4177_v37 }
 0x249   :  { %3245 = vmatmul.mubr.f32.vlgmr.msra.gmra.mxu0 %v3863_v49  ;;  %3282 = vmatprep.subr.mxu0 %v3961_v0  ;;  %v4754_v49 = vld [vmem:[#allocation3] sm:$0xff] }
 0x24a   :  { %3314 = vmatprep.mubr.msk.f32.mxu0 %vm3962_vm0, %v3961_v0 }
 0x2c9   :  { %v580_v52 = vpop.f32.mrf.mxu0 }
 0x2cb   :  { %v3106_v53 = vpop.f32.mrf.mxu0 }
 0x2e9   :  { %v754_v55 = vpop.f32.mrf.mxu0 }
 0x2ea   :  { %v755_v57 = vadd.f32 %v754_v55, %v580_v52 }
 0x2eb   :  { %v3176_v61 = vpop.f32.mrf.mxu0 }
 0x2ec   :  { %v758_v62 = vadd.f32 %v4403_v8, %v755_v57 }
 0x2ee   :  { %3864 = vtanh.f32 %v758_v62 }
 0x2fb   :  { %v4483_v63 = vpop.eup %3864 }
 0x2fc   :  { %3210 = vmatmul.mubr.f32.vlgmr.msra.gmra.mxu1 %v4483_v63 }
 0x2fd   :  { %3248 = vmatpush3.msra.mxu1 %v4220_v39  ;;  %3279 = vmatprep.mubr.msk.f32.mxu1 %vm3962_vm0, %v3961_v0 }
 0x2fe   :  { %3249 = vmatprep.subr.mxu1 %v3961_v0 }
 0x2ff   :  { %3250 = vmatpush3.msra.mxu1 %v4222_v40 }
 0x300   :  { %3251 = vmatprep.subr.mxu1 %v3961_v0 }
 0x301   :  { %3252 = vmatpush3.msra.mxu1 %v4226_v41 }
 0x302   :  { %3253 = vmatprep.subr.mxu1 %v3961_v0 }
 0x303   :  { %3254 = vmatpush3.msra.mxu1 %v4230_v42 }
 0x304   :  { %3255 = vmatprep.subr.mxu1 %v3961_v0 }
 0x305   :  { %3256 = vmatpush3.msra.mxu1 %v4234_v43 }
 0x306   :  { %3257 = vmatprep.subr.mxu1 %v3961_v0 }
 0x307   :  { %3258 = vmatpush3.msra.mxu1 %v4238_v44 }
 0x308   :  { %3259 = vmatprep.subr.mxu1 %v3961_v0 }
 0x309   :  { %3260 = vmatpush3.msra.mxu1 %v4242_v45  ;;  %v929_v10 = vpop.f32.mrf.mxu0 }
 0x30a   :  { %v933_v12 = vadd.f32 %v929_v10, %v197_v9  ;;  %3261 = vmatprep.subr.mxu1 %v3961_v0  ;;  %v4795_v9 = vld [vmem:[#allocation5 + $0x78] sm:$0xff] }
 0x30b   :  { %3262 = vmatpush3.msra.mxu1 %v4246_v46  ;;  %v3246_v21 = vpop.f32.mrf.mxu0 }
 0x30c   :  { %3866 = vtanh.f32 %v933_v12  ;;  %3263 = vmatprep.subr.mxu1 %v3961_v0  ;;  %v4800_v12 = vld [vmem:[#allocation5 + $0x70] sm:$0xff]  ;;  %v4806_v21 = vld [vmem:[#allocation5 + $0x68] sm:$0xff] }
 0x30d   :  { %3264 = vmatpush3.msra.mxu1 %v4252_v47 }
 0x30e   :  { %3265 = vmatprep.subr.mxu1 %v3961_v0 }
 0x30f   :  { %3266 = vmatpush3.msra.mxu1 %v4263_v50 }
 0x310   :  { %3267 = vmatprep.subr.mxu1 %v3961_v0 }
 0x311   :  { %3268 = vmatpush3.msra.mxu1 %v4266_v51 }
 0x312   :  { %3269 = vmatprep.subr.mxu1 %v3961_v0 }
 0x313   :  { %3270 = vmatpush3.msra.mxu1 %v4277_v54 }
 0x314   :  { %3271 = vmatprep.subr.mxu1 %v3961_v0 }
 0x315   :  { %3272 = vmatpush3.msra.mxu1 %v4285_v56 }
 0x316   :  { %3273 = vmatprep.subr.mxu1 %v3961_v0 }
 0x317   :  { %3274 = vmatpush3.msra.mxu1 %v4293_v58 }
 0x318   :  { %3275 = vmatprep.subr.mxu1 %v3961_v0 }
 0x319   :  { %v3867_v38 = vpop.eup %3866  ;;  %3276 = vmatpush3.msra.mxu1 %v4298_v59 }
 0x31a   :  { %3277 = vmatprep.subr.mxu1 %v3961_v0 }
 0x31b   :  { %3278 = vmatpush3.msra.mxu1 %v4304_v60 }
 0x31c   :  { %3280 = vmatmul.mubr.f32.vlgmr.msra.gmra.mxu1 %v3867_v38  ;;  %3317 = vmatprep.subr.mxu1 %v3961_v0 }
 0x31d   :  { %3318 = vmatpush3.msra.mxu1 %v4115_v22  ;;  %3349 = vmatprep.mubr.msk.f32.mxu1 %vm3962_vm0, %v3961_v0  ;;  %v4558_v22 = vld [vmem:[#allocation7 + $0x78] sm:$0xff] }
 0x31e   :  { %3319 = vmatprep.subr.mxu1 %v3961_v0  ;;  %3283 = vmatpush3.msra.mxu0 %v4558_v22 }
 0x31f   :  { %3320 = vmatpush3.msra.mxu1 %v4119_v23  ;;  %v4560_v23 = vld [vmem:[#allocation7 + $0x70] sm:$0xff]  ;;  %3284 = vmatprep.subr.mxu0 %v3961_v0 }
 0x320   :  { %3321 = vmatprep.subr.mxu1 %v3961_v0  ;;  %3285 = vmatpush3.msra.mxu0 %v4560_v23 }
 0x321   :  { %3322 = vmatpush3.msra.mxu1 %v4125_v24  ;;  %v4565_v24 = vld [vmem:[#allocation7 + $0x68] sm:$0xff]  ;;  %3286 = vmatprep.subr.mxu0 %v3961_v0 }
 0x322   :  { %3323 = vmatprep.subr.mxu1 %v3961_v0  ;;  %3287 = vmatpush3.msra.mxu0 %v4565_v24 }
 0x323   :  { %3324 = vmatpush3.msra.mxu1 %v4129_v25  ;;  %v4571_v25 = vld [vmem:[#allocation7 + $0x60] sm:$0xff]  ;;  %3288 = vmatprep.subr.mxu0 %v3961_v0 }
 0x324   :  { %3325 = vmatprep.subr.mxu1 %v3961_v0  ;;  %3289 = vmatpush3.msra.mxu0 %v4571_v25 }
 0x325   :  { %3326 = vmatpush3.msra.mxu1 %v4133_v26  ;;  %v4577_v26 = vld [vmem:[#allocation7 + $0x58] sm:$0xff]  ;;  %3290 = vmatprep.subr.mxu0 %v3961_v0 }
 0x326   :  { %3327 = vmatprep.subr.mxu1 %v3961_v0  ;;  %3291 = vmatpush3.msra.mxu0 %v4577_v26 }
 0x327   :  { %3328 = vmatpush3.msra.mxu1 %v4137_v27  ;;  %v4583_v27 = vld [vmem:[#allocation7 + $0x50] sm:$0xff]  ;;  %3292 = vmatprep.subr.mxu0 %v3961_v0 }
 0x328   :  { %3329 = vmatprep.subr.mxu1 %v3961_v0  ;;  %3293 = vmatpush3.msra.mxu0 %v4583_v27 }
 0x329   :  { %3330 = vmatpush3.msra.mxu1 %v4141_v28  ;;  %v4589_v28 = vld [vmem:[#allocation7 + $0x48] sm:$0xff]  ;;  %3294 = vmatprep.subr.mxu0 %v3961_v0 }
 0x32a   :  { %3331 = vmatprep.subr.mxu1 %v3961_v0  ;;  %3295 = vmatpush3.msra.mxu0 %v4589_v28 }
 0x32b   :  { %3332 = vmatpush3.msra.mxu1 %v4145_v29  ;;  %3296 = vmatprep.subr.mxu0 %v3961_v0  ;;  %v4600_v29 = vld [vmem:[#allocation7 + $0x40] sm:$0xff] }
 0x32c   :  { %3333 = vmatprep.subr.mxu1 %v3961_v0  ;;  %3297 = vmatpush3.msra.mxu0 %v4600_v29 }
 0x32d   :  { %3334 = vmatpush3.msra.mxu1 %v4149_v30  ;;  %3298 = vmatprep.subr.mxu0 %v3961_v0  ;;  %v4605_v30 = vld [vmem:[#allocation7 + $0x38] sm:$0xff] }
 0x32e   :  { %3335 = vmatprep.subr.mxu1 %v3961_v0  ;;  %3299 = vmatpush3.msra.mxu0 %v4605_v30 }
 0x32f   :  { %3336 = vmatpush3.msra.mxu1 %v4153_v31  ;;  %3300 = vmatprep.subr.mxu0 %v3961_v0  ;;  %v4611_v31 = vld [vmem:[#allocation7 + $0x30] sm:$0xff] }
 0x330   :  { %3337 = vmatprep.subr.mxu1 %v3961_v0  ;;  %3301 = vmatpush3.msra.mxu0 %v4611_v31 }
 0x331   :  { %3338 = vmatpush3.msra.mxu1 %v4157_v32  ;;  %v4615_v32 = vld [vmem:[#allocation7 + $0x28] sm:$0xff]  ;;  %3302 = vmatprep.subr.mxu0 %v3961_v0 }
 0x332   :  { %3339 = vmatprep.subr.mxu1 %v3961_v0  ;;  %3303 = vmatpush3.msra.mxu0 %v4615_v32 }
 0x333   :  { %3340 = vmatpush3.msra.mxu1 %v4161_v33  ;;  %v4619_v33 = vld [vmem:[#allocation7 + $0x20] sm:$0xff]  ;;  %3304 = vmatprep.subr.mxu0 %v3961_v0 }
 0x334   :  { %3341 = vmatprep.subr.mxu1 %v3961_v0  ;;  %3305 = vmatpush3.msra.mxu0 %v4619_v33 }
 0x335   :  { %3342 = vmatpush3.msra.mxu1 %v4165_v34  ;;  %v4625_v34 = vld [vmem:[#allocation7 + $0x18] sm:$0xff]  ;;  %3306 = vmatprep.subr.mxu0 %v3961_v0 }
 0x336   :  { %3343 = vmatprep.subr.mxu1 %v3961_v0  ;;  %3307 = vmatpush3.msra.mxu0 %v4625_v34 }
 0x337   :  { %3344 = vmatpush3.msra.mxu1 %v4169_v35  ;;  %v4631_v35 = vld [vmem:[#allocation7 + $0x10] sm:$0xff]  ;;  %3308 = vmatprep.subr.mxu0 %v3961_v0 }
 0x338   :  { %3345 = vmatprep.subr.mxu1 %v3961_v0  ;;  %3309 = vmatpush3.msra.mxu0 %v4631_v35 }
 0x339   :  { %3346 = vmatpush3.msra.mxu1 %v4173_v36  ;;  %v4637_v36 = vld [vmem:[#allocation7 + $0x8] sm:$0xff]  ;;  %3310 = vmatprep.subr.mxu0 %v3961_v0 }
 0x33a   :  { %3347 = vmatprep.subr.mxu1 %v3961_v0  ;;  %3311 = vmatpush3.msra.mxu0 %v4637_v36 }
 0x33b   :  { %3348 = vmatpush3.msra.mxu1 %v4177_v37  ;;  %v4643_v37 = vld [vmem:[#allocation7] sm:$0xff]  ;;  %3312 = vmatprep.subr.mxu0 %v3961_v0 }
 0x33c   :  { %3350 = vmatmul.mubr.f32.vlgmr.msra.gmra.mxu1 %v3867_v38  ;;  %3387 = vmatprep.subr.mxu1 %v3961_v0  ;;  %v4814_v38 = vld [vmem:[#allocation5 + $0x58] sm:$0xff] }
 0x33d   :  { %3419 = vmatprep.mubr.msk.f32.mxu1 %vm3962_vm0, %v3961_v0  ;;  %3388 = vmatpush3.msra.mxu1 %v4558_v22 }
 0x33e   :  { %3389 = vmatprep.subr.mxu1 %v3961_v0  ;;  %3313 = vmatpush3.msra.mxu0 %v4643_v37 }
 0x33f   :  { %3390 = vmatpush3.msra.mxu1 %v4560_v23  ;;  %3352 = vmatprep.subr.mxu0 %v3961_v0 }
 0x340   :  { %3391 = vmatprep.subr.mxu1 %v3961_v0 }
 0x341   :  { %3392 = vmatpush3.msra.mxu1 %v4565_v24 }
 0x342   :  { %3393 = vmatprep.subr.mxu1 %v3961_v0 }
 0x343   :  { %3394 = vmatpush3.msra.mxu1 %v4571_v25 }
 0x344   :  { %3395 = vmatprep.subr.mxu1 %v3961_v0 }
 0x345   :  { %3396 = vmatpush3.msra.mxu1 %v4577_v26 }
 0x346   :  { %3397 = vmatprep.subr.mxu1 %v3961_v0 }
 0x347   :  { %3398 = vmatpush3.msra.mxu1 %v4583_v27 }
 0x348   :  { %3399 = vmatprep.subr.mxu1 %v3961_v0 }
 0x349   :  { %3400 = vmatpush3.msra.mxu1 %v4589_v28 }
 0x34a   :  { %3401 = vmatprep.subr.mxu1 %v3961_v0 }
 0x34b   :  { %3402 = vmatpush3.msra.mxu1 %v4600_v29 }
 0x34c   :  { %3403 = vmatprep.subr.mxu1 %v3961_v0 }
 0x34d   :  { %3404 = vmatpush3.msra.mxu1 %v4605_v30 }
 0x34e   :  { %3405 = vmatprep.subr.mxu1 %v3961_v0 }
 0x34f   :  { %3406 = vmatpush3.msra.mxu1 %v4611_v31 }
 0x350   :  { %3407 = vmatprep.subr.mxu1 %v3961_v0 }
 0x351   :  { %3408 = vmatpush3.msra.mxu1 %v4615_v32 }
 0x352   :  { %3409 = vmatprep.subr.mxu1 %v3961_v0 }
 0x353   :  { %3410 = vmatpush3.msra.mxu1 %v4619_v33 }
 0x354   :  { %3411 = vmatprep.subr.mxu1 %v3961_v0 }
 0x355   :  { %3412 = vmatpush3.msra.mxu1 %v4625_v34 }
 0x356   :  { %3413 = vmatprep.subr.mxu1 %v3961_v0 }
 0x357   :  { %3414 = vmatpush3.msra.mxu1 %v4631_v35 }
 0x358   :  { %3415 = vmatprep.subr.mxu1 %v3961_v0 }
 0x359   :  { %3416 = vmatpush3.msra.mxu1 %v4637_v36 }
 0x35a   :  { %3417 = vmatprep.subr.mxu1 %v3961_v0 }
 0x35b   :  { %3418 = vmatpush3.msra.mxu1 %v4643_v37 }
 0x35c   :  { %3457 = vmatprep.subr.mxu1 %v3961_v0 }
 0x3bc   :  { %v843_v48 = vpop.f32.mrf.mxu1 }
 0x3be   :  { %v3211_v2 = vpop.f32.mrf.mxu1 }
 0x3bf   :  { %v4822_v2 = vld [vmem:[#allocation5 + $0x48] sm:$0xff] }
 0x3dc   :  { %v1017_v11 = vpop.f32.mrf.mxu1 }
 0x3dd   :  { %v1018_v13 = vadd.f32 %v1017_v11, %v843_v48  ;;  %v4818_v48 = vld [vmem:[#allocation5 + $0x50] sm:$0xff]  ;;  %v207_v11 = vadd.f32 %v4317_v7, %v4394_v4  ;;  %v4844_v4 = vld [vmem:[#allocation5 + $0x20] sm:$0xff] }
 0x3de   :  { %v3281_v14 = vpop.f32.mrf.mxu1 }
 0x3df   :  { %v1021_v15 = vadd.f32 %v4403_v8, %v1018_v13  ;;  %v4828_v13 = vld [vmem:[#allocation5 + $0x40] sm:$0xff] }
 0x3e1   :  { %3868 = vtanh.f32 %v1021_v15 }
 0x3ee   :  { %v4655_v17 = vpop.eup %3868 }
 0x3ef   :  { %3315 = vmatmul.mubr.f32.vlgmr.msra.gmra.mxu0 %v4655_v17 }
 0x3f0   :  { %3353 = vmatpush3.msra.mxu0 %v4220_v39  ;;  %3384 = vmatprep.mubr.msk.f32.mxu0 %vm3962_vm0, %v3961_v0  ;;  %v202_v39 = vadd.f32 %v4388_v1, %v4317_v7  ;;  %v4738_v1 = vld [vmem:[#allocation3 + $0x20] sm:$0xff]  ;;  %v4840_v7 = vld [vmem:[#allocation5 + $0x28] sm:$0xff] }
 0x3f1   :  { %3354 = vmatprep.subr.mxu0 %v3961_v0 }
 0x3f2   :  { %3355 = vmatpush3.msra.mxu0 %v4222_v40 }
 0x3f3   :  { %3356 = vmatprep.subr.mxu0 %v3961_v0 }
 0x3f4   :  { %3357 = vmatpush3.msra.mxu0 %v4226_v41 }
 0x3f5   :  { %3358 = vmatprep.subr.mxu0 %v3961_v0 }
 0x3f6   :  { %3359 = vmatpush3.msra.mxu0 %v4230_v42 }
 0x3f7   :  { %3360 = vmatprep.subr.mxu0 %v3961_v0 }
 0x3f8   :  { %3361 = vmatpush3.msra.mxu0 %v4234_v43 }
 0x3f9   :  { %3362 = vmatprep.subr.mxu0 %v3961_v0 }
 0x3fa   :  { %3363 = vmatpush3.msra.mxu0 %v4238_v44  ;;  %v4692_v44 = vld [vmem:[#allocation3 + $0x78] sm:$0xff] }
 0x3fb   :  { %3364 = vmatprep.subr.mxu0 %v3961_v0 }
 0x3fc   :  { %3365 = vmatpush3.msra.mxu0 %v4242_v45  ;;  %v1192_v40 = vpop.f32.mrf.mxu1  ;;  %v4696_v45 = vld [vmem:[#allocation3 + $0x70] sm:$0xff] }
 0x3fd   :  { %v1196_v41 = vadd.f32 %v1192_v40, %v202_v39  ;;  %3366 = vmatprep.subr.mxu0 %v3961_v0  ;;  %v4832_v39 = vld [vmem:[#allocation5 + $0x38] sm:$0xff] }
 0x3fe   :  { %3367 = vmatpush3.msra.mxu0 %v4246_v46  ;;  %v3351_v42 = vpop.f32.mrf.mxu1  ;;  %v4702_v46 = vld [vmem:[#allocation3 + $0x68] sm:$0xff] }
 0x3ff   :  { %3870 = vtanh.f32 %v1196_v41  ;;  %3368 = vmatprep.subr.mxu0 %v3961_v0  ;;  %v4836_v41 = vld [vmem:[#allocation5 + $0x30] sm:$0xff]  ;;  %v4848_v42 = vld [vmem:[#allocation5 + $0x18] sm:$0xff] }
 0x400   :  { %3369 = vmatpush3.msra.mxu0 %v4252_v47  ;;  %v4706_v47 = vld [vmem:[#allocation3 + $0x60] sm:$0xff] }
 0x401   :  { %3370 = vmatprep.subr.mxu0 %v3961_v0 }
 0x402   :  { %3371 = vmatpush3.msra.mxu0 %v4263_v50  ;;  %v4710_v50 = vld [vmem:[#allocation3 + $0x58] sm:$0xff] }
 0x403   :  { %3372 = vmatprep.subr.mxu0 %v3961_v0 }
 0x404   :  { %3373 = vmatpush3.msra.mxu0 %v4266_v51  ;;  %v4714_v51 = vld [vmem:[#allocation3 + $0x50] sm:$0xff] }
 0x405   :  { %3374 = vmatprep.subr.mxu0 %v3961_v0 }
 0x406   :  { %3375 = vmatpush3.msra.mxu0 %v4277_v54  ;;  %v4718_v54 = vld [vmem:[#allocation3 + $0x48] sm:$0xff] }
 0x407   :  { %3376 = vmatprep.subr.mxu0 %v3961_v0 }
 0x408   :  { %3377 = vmatpush3.msra.mxu0 %v4285_v56  ;;  %v4722_v56 = vld [vmem:[#allocation3 + $0x40] sm:$0xff] }
 0x409   :  { %3378 = vmatprep.subr.mxu0 %v3961_v0 }
 0x40a   :  { %3379 = vmatpush3.msra.mxu0 %v4293_v58  ;;  %v4726_v58 = vld [vmem:[#allocation3 + $0x38] sm:$0xff] }
 0x40b   :  { %3380 = vmatprep.subr.mxu0 %v3961_v0 }
 0x40c   :  { %v3871_v43 = vpop.eup %3870  ;;  %3381 = vmatpush3.msra.mxu0 %v4298_v59  ;;  %v4730_v59 = vld [vmem:[#allocation3 + $0x30] sm:$0xff] }
 0x40d   :  { %3382 = vmatprep.subr.mxu0 %v3961_v0 }
 0x40e   :  { %3383 = vmatpush3.msra.mxu0 %v4304_v60  ;;  %v4734_v60 = vld [vmem:[#allocation3 + $0x28] sm:$0xff] }
 0x40f   :  { %3385 = vmatmul.mubr.f32.vlgmr.msra.gmra.mxu0 %v3871_v43  ;;  %3422 = vmatprep.subr.mxu0 %v3961_v0 }
 0x410   :  { %3423 = vmatpush3.msra.mxu0 %v4692_v44  ;;  %3454 = vmatprep.mubr.msk.f32.mxu0 %vm3962_vm0, %v3961_v0 }
 0x411   :  { %3424 = vmatprep.subr.mxu0 %v3961_v0 }
 0x412   :  { %3425 = vmatpush3.msra.mxu0 %v4696_v45 }
 0x413   :  { %3426 = vmatprep.subr.mxu0 %v3961_v0 }
 0x414   :  { %3427 = vmatpush3.msra.mxu0 %v4702_v46 }
 0x415   :  { %3428 = vmatprep.subr.mxu0 %v3961_v0 }
 0x416   :  { %3429 = vmatpush3.msra.mxu0 %v4706_v47 }
 0x417   :  { %3430 = vmatprep.subr.mxu0 %v3961_v0 }
 0x418   :  { %3431 = vmatpush3.msra.mxu0 %v4710_v50 }
 0x419   :  { %3432 = vmatprep.subr.mxu0 %v3961_v0 }
 0x41a   :  { %3433 = vmatpush3.msra.mxu0 %v4714_v51 }
 0x41b   :  { %3434 = vmatprep.subr.mxu0 %v3961_v0 }
 0x41c   :  { %3435 = vmatpush3.msra.mxu0 %v4718_v54 }
 0x41d   :  { %3436 = vmatprep.subr.mxu0 %v3961_v0 }
 0x41e   :  { %3437 = vmatpush3.msra.mxu0 %v4722_v56 }
 0x41f   :  { %3438 = vmatprep.subr.mxu0 %v3961_v0 }
 0x420   :  { %3439 = vmatpush3.msra.mxu0 %v4726_v58 }
 0x421   :  { %3440 = vmatprep.subr.mxu0 %v3961_v0 }
 0x422   :  { %3441 = vmatpush3.msra.mxu0 %v4730_v59 }
 0x423   :  { %3442 = vmatprep.subr.mxu0 %v3961_v0 }
 0x424   :  { %3443 = vmatpush3.msra.mxu0 %v4734_v60 }
 0x425   :  { %3444 = vmatprep.subr.mxu0 %v3961_v0 }
 0x426   :  { %3445 = vmatpush3.msra.mxu0 %v4738_v1 }
 0x427   :  { %3446 = vmatprep.subr.mxu0 %v3961_v0 }
 0x428   :  { %3447 = vmatpush3.msra.mxu0 %v4742_v18 }
 0x429   :  { %3448 = vmatprep.subr.mxu0 %v3961_v0 }
 0x42a   :  { %3449 = vmatpush3.msra.mxu0 %v4746_v19 }
 0x42b   :  { %3450 = vmatprep.subr.mxu0 %v3961_v0 }
 0x42c   :  { %3451 = vmatpush3.msra.mxu0 %v4750_v20 }
 0x42d   :  { %3452 = vmatprep.subr.mxu0 %v3961_v0 }
 0x42e   :  { %3453 = vmatpush3.msra.mxu0 %v4754_v49 }
 0x42f   :  { %3455 = vmatmul.mubr.f32.vlgmr.msra.gmra.mxu0 %v3871_v43  ;;  %3492 = vmatprep.subr.mxu0 %v3961_v0  ;;  %v4852_v43 = vld [vmem:[#allocation5 + $0x10] sm:$0xff] }
 0x430   :  { %3493 = vmatpush3.msra.mxu0 %v4558_v22  ;;  %3524 = vmatprep.mubr.msk.f32.mxu0 %vm3962_vm0, %v3961_v0 }
 0x431   :  { %3494 = vmatprep.subr.mxu0 %v3961_v0 }
 0x432   :  { %3495 = vmatpush3.msra.mxu0 %v4560_v23 }
 0x433   :  { %3496 = vmatprep.subr.mxu0 %v3961_v0 }
 0x434   :  { %3497 = vmatpush3.msra.mxu0 %v4565_v24 }
 0x435   :  { %3498 = vmatprep.subr.mxu0 %v3961_v0 }
 0x436   :  { %3499 = vmatpush3.msra.mxu0 %v4571_v25 }
 0x437   :  { %3500 = vmatprep.subr.mxu0 %v3961_v0 }
 0x438   :  { %3501 = vmatpush3.msra.mxu0 %v4577_v26 }
 0x439   :  { %3502 = vmatprep.subr.mxu0 %v3961_v0 }
 0x43a   :  { %3503 = vmatpush3.msra.mxu0 %v4583_v27 }
 0x43b   :  { %3504 = vmatprep.subr.mxu0 %v3961_v0 }
 0x43c   :  { %3505 = vmatpush3.msra.mxu0 %v4589_v28 }
 0x43d   :  { %3506 = vmatprep.subr.mxu0 %v3961_v0 }
 0x43e   :  { %3507 = vmatpush3.msra.mxu0 %v4600_v29 }
 0x43f   :  { %3508 = vmatprep.subr.mxu0 %v3961_v0 }
 0x440   :  { %3509 = vmatpush3.msra.mxu0 %v4605_v30 }
 0x441   :  { %3510 = vmatprep.subr.mxu0 %v3961_v0 }
 0x442   :  { %3511 = vmatpush3.msra.mxu0 %v4611_v31 }
 0x443   :  { %3512 = vmatprep.subr.mxu0 %v3961_v0 }
 0x444   :  { %3513 = vmatpush3.msra.mxu0 %v4615_v32 }
 0x445   :  { %3514 = vmatprep.subr.mxu0 %v3961_v0 }
 0x446   :  { %3515 = vmatpush3.msra.mxu0 %v4619_v33 }
 0x447   :  { %3516 = vmatprep.subr.mxu0 %v3961_v0 }
 0x448   :  { %3517 = vmatpush3.msra.mxu0 %v4625_v34 }
 0x449   :  { %3518 = vmatprep.subr.mxu0 %v3961_v0 }
 0x44a   :  { %3519 = vmatpush3.msra.mxu0 %v4631_v35 }
 0x44b   :  { %3520 = vmatprep.subr.mxu0 %v3961_v0 }
 0x44c   :  { %3521 = vmatpush3.msra.mxu0 %v4637_v36 }
 0x44d   :  { %3522 = vmatprep.subr.mxu0 %v3961_v0 }
 0x44e   :  { %3523 = vmatpush3.msra.mxu0 %v4643_v37 }
 0x44f   :  { %3562 = vmatprep.subr.mxu0 %v3961_v0 }
 0x4af   :  { %v1106_v52 = vpop.f32.mrf.mxu0 }
 0x4b1   :  { %v3316_v53 = vpop.f32.mrf.mxu0 }
 0x4b2   :  { %v4860_v53 = vld [vmem:[#allocation5] sm:$0xff] }
 0x4cf   :  { %v1280_v55 = vpop.f32.mrf.mxu0 }
 0x4d0   :  { %v1281_v57 = vadd.f32 %v1280_v55, %v1106_v52  ;;  %v4856_v52 = vld [vmem:[#allocation5 + $0x8] sm:$0xff] }
 0x4d1   :  { %v3386_v61 = vpop.f32.mrf.mxu0 }
 0x4d2   :  { %v1284_v62 = vadd.f32 %v4403_v8, %v1281_v57  ;;  %v4810_v8 = vld [vmem:[#allocation5 + $0x60] sm:$0xff] }
 0x4d4   :  { %3872 = vtanh.f32 %v1284_v62 }
 0x4e1   :  { %v4797_v10 = vpop.eup %3872 }
 0x4e2   :  { %3420 = vmatmul.mubr.f32.vlgmr.msra.gmra.mxu1 %v4797_v10 }
 0x4e3   :  { %3458 = vmatpush3.msra.mxu1 %v4795_v9  ;;  %3489 = vmatprep.mubr.msk.f32.mxu1 %vm3962_vm0, %v3961_v0 }
 0x4e4   :  { %3459 = vmatprep.subr.mxu1 %v3961_v0 }
 0x4e5   :  { %3460 = vmatpush3.msra.mxu1 %v4800_v12 }
 0x4e6   :  { %3461 = vmatprep.subr.mxu1 %v3961_v0 }
 0x4e7   :  { %3462 = vmatpush3.msra.mxu1 %v4806_v21 }
 0x4e8   :  { %3463 = vmatprep.subr.mxu1 %v3961_v0 }
 0x4e9   :  { %3464 = vmatpush3.msra.mxu1 %v4810_v8 }
 0x4ea   :  { %3465 = vmatprep.subr.mxu1 %v3961_v0 }
 0x4eb   :  { %3466 = vmatpush3.msra.mxu1 %v4814_v38 }
 0x4ec   :  { %3467 = vmatprep.subr.mxu1 %v3961_v0 }
 0x4ed   :  { %3468 = vmatpush3.msra.mxu1 %v4818_v48 }
 0x4ee   :  { %3469 = vmatprep.subr.mxu1 %v3961_v0 }
 0x4ef   :  { %3470 = vmatpush3.msra.mxu1 %v4822_v2  ;;  %v1455_v14 = vpop.f32.mrf.mxu0 }
 0x4f0   :  { %v1459_v15 = vadd.f32 %v1455_v14, %v207_v11  ;;  %3471 = vmatprep.subr.mxu1 %v3961_v0  ;;  %v2351_v14 = vld [vmem:[%s5225_s8 + $0x8] sm:$0xff] }
 0x4f1   :  { %3472 = vmatpush3.msra.mxu1 %v4828_v13  ;;  %v3456_v40 = vpop.f32.mrf.mxu0 }
 0x4f2   :  { %3874 = vtanh.f32 %v1459_v15  ;;  %3473 = vmatprep.subr.mxu1 %v3961_v0  ;;  %v2350_v15 = vld [vmem:[%s5225_s8] sm:$0xff]  ;;  %v2083_v40 = vld [vmem:[#allocation7 + $0x38] sm:$0xff] }
 0x4f3   :  { %3474 = vmatpush3.msra.mxu1 %v4832_v39 }
 0x4f4   :  { %3475 = vmatprep.subr.mxu1 %v3961_v0 }
 0x4f5   :  { %3476 = vmatpush3.msra.mxu1 %v4836_v41 }
 0x4f6   :  { %3477 = vmatprep.subr.mxu1 %v3961_v0 }
 0x4f7   :  { %3478 = vmatpush3.msra.mxu1 %v4840_v7 }
 0x4f8   :  { %3479 = vmatprep.subr.mxu1 %v3961_v0 }
 0x4f9   :  { %3480 = vmatpush3.msra.mxu1 %v4844_v4 }
 0x4fa   :  { %3481 = vmatprep.subr.mxu1 %v3961_v0 }
 0x4fb   :  { %3482 = vmatpush3.msra.mxu1 %v4848_v42 }
 0x4fc   :  { %3483 = vmatprep.subr.mxu1 %v3961_v0 }
 0x4fd   :  { %3484 = vmatpush3.msra.mxu1 %v4852_v43 }
 0x4fe   :  { %3485 = vmatprep.subr.mxu1 %v3961_v0 }
 0x4ff   :  { %v3875_v55 = vpop.eup %3874  ;;  %3486 = vmatpush3.msra.mxu1 %v4856_v52 }
 0x500   :  { %3487 = vmatprep.subr.mxu1 %v3961_v0 }
 0x501   :  { %3488 = vmatpush3.msra.mxu1 %v4860_v53 }
 0x502   :  { %3490 = vmatmul.mubr.f32.vlgmr.msra.gmra.mxu1 %v3875_v55  ;;  %3527 = vmatprep.subr.mxu1 %v3961_v0 }
 0x503   :  { %3528 = vmatpush3.msra.mxu1 %v4692_v44  ;;  %3559 = vmatprep.mubr.msk.f32.mxu1 %vm3962_vm0, %v3961_v0 }
 0x504   :  { %3529 = vmatprep.subr.mxu1 %v3961_v0 }
 0x505   :  { %3530 = vmatpush3.msra.mxu1 %v4696_v45 }
 0x506   :  { %3531 = vmatprep.subr.mxu1 %v3961_v0 }
 0x507   :  { %3532 = vmatpush3.msra.mxu1 %v4702_v46 }
 0x508   :  { %3533 = vmatprep.subr.mxu1 %v3961_v0 }
 0x509   :  { %3534 = vmatpush3.msra.mxu1 %v4706_v47 }
 0x50a   :  { %3535 = vmatprep.subr.mxu1 %v3961_v0 }
 0x50b   :  { %3536 = vmatpush3.msra.mxu1 %v4710_v50 }
 0x50c   :  { %3537 = vmatprep.subr.mxu1 %v3961_v0 }
 0x50d   :  { %3538 = vmatpush3.msra.mxu1 %v4714_v51 }
 0x50e   :  { %3539 = vmatprep.subr.mxu1 %v3961_v0 }
 0x50f   :  { %3540 = vmatpush3.msra.mxu1 %v4718_v54 }
 0x510   :  { %3541 = vmatprep.subr.mxu1 %v3961_v0 }
 0x511   :  { %3542 = vmatpush3.msra.mxu1 %v4722_v56 }
 0x512   :  { %3543 = vmatprep.subr.mxu1 %v3961_v0 }
 0x513   :  { %3544 = vmatpush3.msra.mxu1 %v4726_v58 }
 0x514   :  { %3545 = vmatprep.subr.mxu1 %v3961_v0 }
 0x515   :  { %3546 = vmatpush3.msra.mxu1 %v4730_v59 }
 0x516   :  { %3547 = vmatprep.subr.mxu1 %v3961_v0 }
 0x517   :  { %3548 = vmatpush3.msra.mxu1 %v4734_v60 }
 0x518   :  { %3549 = vmatprep.subr.mxu1 %v3961_v0 }
 0x519   :  { %3550 = vmatpush3.msra.mxu1 %v4738_v1 }
 0x51a   :  { %3551 = vmatprep.subr.mxu1 %v3961_v0 }
 0x51b   :  { %3552 = vmatpush3.msra.mxu1 %v4742_v18 }
 0x51c   :  { %3553 = vmatprep.subr.mxu1 %v3961_v0 }
 0x51d   :  { %3554 = vmatpush3.msra.mxu1 %v4746_v19 }
 0x51e   :  { %3555 = vmatprep.subr.mxu1 %v3961_v0 }
 0x51f   :  { %3556 = vmatpush3.msra.mxu1 %v4750_v20 }
 0x520   :  { %3557 = vmatprep.subr.mxu1 %v3961_v0 }
 0x521   :  { %3558 = vmatpush3.msra.mxu1 %v4754_v49 }
 0x522   :  { %3560 = vmatmul.mubr.f32.vlgmr.msra.gmra.mxu1 %v3875_v55  ;;  %3597 = vmatprep.subr.mxu1 %v3961_v0 }
 0x523   :  { %3598 = vmatpush3.msra.mxu1 %v4558_v22  ;;  %3629 = vmatprep.mubr.msk.f32.mxu1 %vm3962_vm0, %v3961_v0 }
 0x524   :  { %3599 = vmatprep.subr.mxu1 %v3961_v0 }
 0x525   :  { %3600 = vmatpush3.msra.mxu1 %v4560_v23 }
 0x526   :  { %3601 = vmatprep.subr.mxu1 %v3961_v0 }
 0x527   :  { %3602 = vmatpush3.msra.mxu1 %v4565_v24 }
 0x528   :  { %3603 = vmatprep.subr.mxu1 %v3961_v0 }
 0x529   :  { %3604 = vmatpush3.msra.mxu1 %v4571_v25 }
 0x52a   :  { %3605 = vmatprep.subr.mxu1 %v3961_v0 }
 0x52b   :  { %3606 = vmatpush3.msra.mxu1 %v4577_v26 }
 0x52c   :  { %3607 = vmatprep.subr.mxu1 %v3961_v0 }
 0x52d   :  { %3608 = vmatpush3.msra.mxu1 %v4583_v27  ;;  %v4937_v27 = vld [vmem:[%s5224_s7] ss:$0 sm:$0xff] }
 0x52e   :  { %3609 = vmatprep.subr.mxu1 %v3961_v0 }
 0x52f   :  { %3610 = vmatpush3.msra.mxu1 %v4589_v28 }
 0x530   :  { %3611 = vmatprep.subr.mxu1 %v3961_v0 }
 0x531   :  { %3612 = vmatpush3.msra.mxu1 %v4600_v29 }
 0x532   :  { %3613 = vmatprep.subr.mxu1 %v3961_v0 }
 0x533   :  { %3614 = vmatpush3.msra.mxu1 %v4605_v30  ;;  %v4959_v30 = vld [vmem:[%s5221_s4] ss:$0 sm:$0xff] }
 0x534   :  { %3615 = vmatprep.subr.mxu1 %v3961_v0 }
 0x535   :  { %3616 = vmatpush3.msra.mxu1 %v4611_v31  ;;  %v212_v31 = vadd.f32 %v4959_v30, %v4392_v3 }
 0x536   :  { %3617 = vmatprep.subr.mxu1 %v3961_v0 }
 0x537   :  { %3618 = vmatpush3.msra.mxu1 %v4615_v32 }
 0x538   :  { %3619 = vmatprep.subr.mxu1 %v3961_v0 }
 0x539   :  { %3620 = vmatpush3.msra.mxu1 %v4619_v33 }
 0x53a   :  { %3621 = vmatprep.subr.mxu1 %v3961_v0 }
 0x53b   :  { %3622 = vmatpush3.msra.mxu1 %v4625_v34 }
 0x53c   :  { %3623 = vmatprep.subr.mxu1 %v3961_v0 }
 0x53d   :  { %3624 = vmatpush3.msra.mxu1 %v4631_v35 }
 0x53e   :  { %3625 = vmatprep.subr.mxu1 %v3961_v0 }
 0x53f   :  { %3626 = vmatpush3.msra.mxu1 %v4637_v36 }
 0x540   :  { %3627 = vmatprep.subr.mxu1 %v3961_v0 }
 0x541   :  { %3628 = vmatpush3.msra.mxu1 %v4643_v37 }
 0x542   :  { %3667 = vmatprep.subr.mxu1 %v3961_v0 }
 0x5a2   :  { %v1369_v22 = vpop.f32.mrf.mxu1 }
 0x5a4   :  { %v3421_v23 = vpop.f32.mrf.mxu1 }
 0x5c2   :  { %v1543_v24 = vpop.f32.mrf.mxu1 }
 0x5c3   :  { %v1544_v25 = vadd.f32 %v1543_v24, %v1369_v22  ;;  %v2265_v24 = vld [vmem:[#allocation5 + $0x78] sm:$0xff] }
 0x5c4   :  { %v3491_v26 = vpop.f32.mrf.mxu1 }
 0x5c5   :  { %v1547_v28 = vadd.f32 %v4937_v27, %v1544_v25  ;;  %v2264_v26 = vld [vmem:[#allocation5 + $0x70] sm:$0xff] }
 0x5c7   :  { %3876 = vtanh.f32 %v1547_v28  ;;  %v2263_v28 = vld [vmem:[#allocation5 + $0x68] sm:$0xff] }
 0x5d4   :  { %v4940_v29 = vpop.eup %3876 }
 0x5d5   :  { %3525 = vmatmul.mubr.f32.vlgmr.msra.gmra.mxu0 %v4940_v29 }
 0x5d6   :  { %3563 = vmatpush3.msra.mxu0 %v4795_v9  ;;  %3594 = vmatprep.mubr.msk.f32.mxu0 %vm3962_vm0, %v3961_v0 }
 0x5d7   :  { %3564 = vmatprep.subr.mxu0 %v3961_v0 }
 0x5d8   :  { %3565 = vmatpush3.msra.mxu0 %v4800_v12 }
 0x5d9   :  { %3566 = vmatprep.subr.mxu0 %v3961_v0 }
 0x5da   :  { %3567 = vmatpush3.msra.mxu0 %v4806_v21 }
 0x5db   :  { %3568 = vmatprep.subr.mxu0 %v3961_v0 }
 0x5dc   :  { %3569 = vmatpush3.msra.mxu0 %v4810_v8 }
 0x5dd   :  { %3570 = vmatprep.subr.mxu0 %v3961_v0 }
 0x5de   :  { %3571 = vmatpush3.msra.mxu0 %v4814_v38 }
 0x5df   :  { %3572 = vmatprep.subr.mxu0 %v3961_v0 }
 0x5e0   :  { %3573 = vmatpush3.msra.mxu0 %v4818_v48 }
 0x5e1   :  { %3574 = vmatprep.subr.mxu0 %v3961_v0 }
 0x5e2   :  { %3575 = vmatpush3.msra.mxu0 %v4822_v2  ;;  %v1718_v32 = vpop.f32.mrf.mxu1 }
 0x5e3   :  { %v1722_v33 = vadd.f32 %v1718_v32, %v212_v31  ;;  %3576 = vmatprep.subr.mxu0 %v3961_v0  ;;  %v2261_v31 = vld [vmem:[#allocation5 + $0x58] sm:$0xff]  ;;  %v2260_v32 = vld [vmem:[#allocation5 + $0x50] sm:$0xff] }
 0x5e4   :  { %3577 = vmatpush3.msra.mxu0 %v4828_v13  ;;  %v3561_v34 = vpop.f32.mrf.mxu1 }
 0x5e5   :  { %3878 = vtanh.f32 %v1722_v33  ;;  %3578 = vmatprep.subr.mxu0 %v3961_v0  ;;  %v2259_v33 = vld [vmem:[#allocation5 + $0x48] sm:$0xff]  ;;  %v222_v34 = vadd.f32 %v4959_v30, %v4396_v5  ;;  %v2254_v5 = vld [vmem:[#allocation5 + $0x20] sm:$0xff] }
 0x5e6   :  { %3579 = vmatpush3.msra.mxu0 %v4832_v39 }
 0x5e7   :  { %3580 = vmatprep.subr.mxu0 %v3961_v0 }
 0x5e8   :  { %3581 = vmatpush3.msra.mxu0 %v4836_v41 }
 0x5e9   :  { %3582 = vmatprep.subr.mxu0 %v3961_v0 }
 0x5ea   :  { %3583 = vmatpush3.msra.mxu0 %v4840_v7 }
 0x5eb   :  { %3584 = vmatprep.subr.mxu0 %v3961_v0 }
 0x5ec   :  { %3585 = vmatpush3.msra.mxu0 %v4844_v4 }
 0x5ed   :  { %3586 = vmatprep.subr.mxu0 %v3961_v0 }
 0x5ee   :  { %3587 = vmatpush3.msra.mxu0 %v4848_v42 }
 0x5ef   :  { %3588 = vmatprep.subr.mxu0 %v3961_v0 }
 0x5f0   :  { %3589 = vmatpush3.msra.mxu0 %v4852_v43 }
 0x5f1   :  { %3590 = vmatprep.subr.mxu0 %v3961_v0 }
 0x5f2   :  { %v3879_v3 = vpop.eup %3878  ;;  %3591 = vmatpush3.msra.mxu0 %v4856_v52 }
 0x5f3   :  { %3592 = vmatprep.subr.mxu0 %v3961_v0 }
 0x5f4   :  { %3593 = vmatpush3.msra.mxu0 %v4860_v53 }
 0x5f5   :  { %3595 = vmatmul.mubr.f32.vlgmr.msra.gmra.mxu0 %v3879_v3  ;;  %3632 = vmatprep.subr.mxu0 %v3961_v0 }
 0x5f6   :  { %3633 = vmatpush3.msra.mxu0 %v4692_v44  ;;  %3664 = vmatprep.mubr.msk.f32.mxu0 %vm3962_vm0, %v3961_v0 }
 0x5f7   :  { %3634 = vmatprep.subr.mxu0 %v3961_v0 }
 0x5f8   :  { %3635 = vmatpush3.msra.mxu0 %v4696_v45 }
 0x5f9   :  { %3636 = vmatprep.subr.mxu0 %v3961_v0 }
 0x5fa   :  { %3637 = vmatpush3.msra.mxu0 %v4702_v46 }
 0x5fb   :  { %3638 = vmatprep.subr.mxu0 %v3961_v0 }
 0x5fc   :  { %3639 = vmatpush3.msra.mxu0 %v4706_v47 }
 0x5fd   :  { %3640 = vmatprep.subr.mxu0 %v3961_v0 }
 0x5fe   :  { %3641 = vmatpush3.msra.mxu0 %v4710_v50 }
 0x5ff   :  { %3642 = vmatprep.subr.mxu0 %v3961_v0 }
 0x600   :  { %3643 = vmatpush3.msra.mxu0 %v4714_v51 }
 0x601   :  { %3644 = vmatprep.subr.mxu0 %v3961_v0 }
 0x602   :  { %3645 = vmatpush3.msra.mxu0 %v4718_v54 }
 0x603   :  { %3646 = vmatprep.subr.mxu0 %v3961_v0 }
 0x604   :  { %3647 = vmatpush3.msra.mxu0 %v4722_v56 }
 0x605   :  { %3648 = vmatprep.subr.mxu0 %v3961_v0 }
 0x606   :  { %3649 = vmatpush3.msra.mxu0 %v4726_v58 }
 0x607   :  { %3650 = vmatprep.subr.mxu0 %v3961_v0 }
 0x608   :  { %3651 = vmatpush3.msra.mxu0 %v4730_v59 }
 0x609   :  { %3652 = vmatprep.subr.mxu0 %v3961_v0 }
 0x60a   :  { %3653 = vmatpush3.msra.mxu0 %v4734_v60 }
 0x60b   :  { %3654 = vmatprep.subr.mxu0 %v3961_v0 }
 0x60c   :  { %3655 = vmatpush3.msra.mxu0 %v4738_v1 }
 0x60d   :  { %3656 = vmatprep.subr.mxu0 %v3961_v0 }
 0x60e   :  { %3657 = vmatpush3.msra.mxu0 %v4742_v18 }
 0x60f   :  { %3658 = vmatprep.subr.mxu0 %v3961_v0 }
 0x610   :  { %3659 = vmatpush3.msra.mxu0 %v4746_v19 }
 0x611   :  { %3660 = vmatprep.subr.mxu0 %v3961_v0 }
 0x612   :  { %3661 = vmatpush3.msra.mxu0 %v4750_v20 }
 0x613   :  { %3662 = vmatprep.subr.mxu0 %v3961_v0 }
 0x614   :  { %3663 = vmatpush3.msra.mxu0 %v4754_v49 }
 0x615   :  { %3665 = vmatmul.mubr.f32.vlgmr.msra.gmra.mxu0 %v3879_v3  ;;  %3702 = vmatprep.subr.mxu0 %v3961_v0  ;;  %v2258_v3 = vld [vmem:[#allocation5 + $0x40] sm:$0xff] }
 0x616   :  { %3734 = vmatprep.mubr.msk.f32.mxu0 %vm3962_vm0, %v3961_v0 }
 0x695   :  { %v1632_v35 = vpop.f32.mrf.mxu0 }
 0x697   :  { %v3526_v36 = vpop.f32.mrf.mxu0 }
 0x6b5   :  { %v1806_v37 = vpop.f32.mrf.mxu0 }
 0x6b6   :  { %v1807_v57 = vadd.f32 %v1806_v37, %v1632_v35  ;;  %v2257_v37 = vld [vmem:[#allocation5 + $0x38] sm:$0xff] }
 0x6b7   :  { %v3596_v61 = vpop.f32.mrf.mxu0 }
 0x6b8   :  { %v1810_v62 = vadd.f32 %v4937_v27, %v1807_v57  ;;  %v2256_v61 = vld [vmem:[#allocation5 + $0x30] sm:$0xff] }
 0x6ba   :  { %3880 = vtanh.f32 %v1810_v62  ;;  %v2255_v62 = vld [vmem:[#allocation5 + $0x28] sm:$0xff] }
 0x6c7   :  { %v5021_v11 = vpop.eup %3880 }
 0x6c8   :  { %3630 = vmatmul.mubr.f32.vlgmr.msra.gmra.mxu1 %v5021_v11 }
 0x6c9   :  { %3668 = vmatpush3.msra.mxu1 %v4795_v9  ;;  %3699 = vmatprep.mubr.msk.f32.mxu1 %vm3962_vm0, %v3961_v0  ;;  %v217_v9 = vadd.f32 %v4959_v30, %v4398_v6  ;;  %v2253_v30 = vld [vmem:[#allocation5 + $0x18] sm:$0xff] }
 0x6ca   :  { %3669 = vmatprep.subr.mxu1 %v3961_v0 }
 0x6cb   :  { %3670 = vmatpush3.msra.mxu1 %v4800_v12 }
 0x6cc   :  { %3671 = vmatprep.subr.mxu1 %v3961_v0 }
 0x6cd   :  { %3672 = vmatpush3.msra.mxu1 %v4806_v21 }
 0x6ce   :  { %3673 = vmatprep.subr.mxu1 %v3961_v0 }
 0x6cf   :  { %3674 = vmatpush3.msra.mxu1 %v4810_v8 }
 0x6d0   :  { %3675 = vmatprep.subr.mxu1 %v3961_v0 }
 0x6d1   :  { %3676 = vmatpush3.msra.mxu1 %v4814_v38  ;;  %v2355_v38 = vld [vmem:[%s5225_s8 + $0x28] sm:$0xff] }
 0x6d2   :  { %3677 = vmatprep.subr.mxu1 %v3961_v0 }
 0x6d3   :  { %3678 = vmatpush3.msra.mxu1 %v4818_v48  ;;  %v2354_v48 = vld [vmem:[%s5225_s8 + $0x20] sm:$0xff] }
 0x6d4   :  { %3679 = vmatprep.subr.mxu1 %v3961_v0 }
 0x6d5   :  { %3680 = vmatpush3.msra.mxu1 %v4822_v2  ;;  %v1981_v12 = vpop.f32.mrf.mxu0  ;;  %v2353_v2 = vld [vmem:[%s5225_s8 + $0x18] sm:$0xff] }
 0x6d6   :  { %v1985_v21 = vadd.f32 %v1981_v12, %v217_v9  ;;  %3681 = vmatprep.subr.mxu1 %v3961_v0  ;;  %v2251_v9 = vld [vmem:[#allocation5 + $0x8] sm:$0xff]  ;;  %v2250_v12 = vld [vmem:[#allocation5] sm:$0xff] }
 0x6d7   :  { %3682 = vmatpush3.msra.mxu1 %v4828_v13  ;;  %v3666_v8 = vpop.f32.mrf.mxu0  ;;  %v2352_v13 = vld [vmem:[%s5225_s8 + $0x10] sm:$0xff] }
 0x6d8   :  { %3882 = vtanh.f32 %v1985_v21  ;;  %3683 = vmatprep.subr.mxu1 %v3961_v0  ;;  %v2508_v8 = vld [vmem:[%s5226_s9] ss:$0 sm:$0xff] }
 0x6d9   :  { %3684 = vmatpush3.msra.mxu1 %v4832_v39  ;;  %v2084_v39 = vld [vmem:[#allocation7 + $0x40] sm:$0xff] }
 0x6da   :  { %3685 = vmatprep.subr.mxu1 %v3961_v0 }
 0x6db   :  { %3686 = vmatpush3.msra.mxu1 %v4836_v41  ;;  %v2082_v41 = vld [vmem:[#allocation7 + $0x30] sm:$0xff] }
 0x6dc   :  { %3687 = vmatprep.subr.mxu1 %v3961_v0 }
 0x6dd   :  { %3688 = vmatpush3.msra.mxu1 %v4840_v7  ;;  %v2081_v7 = vld [vmem:[#allocation7 + $0x28] sm:$0xff] }
 0x6de   :  { %3689 = vmatprep.subr.mxu1 %v3961_v0 }
 0x6df   :  { %3690 = vmatpush3.msra.mxu1 %v4844_v4  ;;  %v2077_v4 = vld [vmem:[#allocation7 + $0x8] sm:$0xff] }
 0x6e0   :  { %3691 = vmatprep.subr.mxu1 %v3961_v0 }
 0x6e1   :  { %3692 = vmatpush3.msra.mxu1 %v4848_v42  ;;  %v2076_v42 = vld [vmem:[#allocation7] sm:$0xff] }
 0x6e2   :  { %3693 = vmatprep.subr.mxu1 %v3961_v0 }
 0x6e3   :  { %3694 = vmatpush3.msra.mxu1 %v4852_v43 }
 0x6e4   :  { %3695 = vmatprep.subr.mxu1 %v3961_v0 }
 0x6e5   :  { %v3883_v6 = vpop.eup %3882  ;;  %3696 = vmatpush3.msra.mxu1 %v4856_v52 }
 0x6e6   :  { %3697 = vmatprep.subr.mxu1 %v3961_v0 }
 0x6e7   :  { %3698 = vmatpush3.msra.mxu1 %v4860_v53 }
 0x6e8   :  { %3700 = vmatmul.mubr.f32.vlgmr.msra.gmra.mxu1 %v3883_v6  ;;  %3737 = vmatprep.subr.mxu1 %v3961_v0 }
 0x6e9   :  { %3738 = vmatpush3.msra.mxu1 %v4692_v44  ;;  %3769 = vmatprep.mubr.msk.f32.mxu1 %vm3962_vm0, %v3961_v0  ;;  %v2365_v44 = vld [vmem:[%s5225_s8 + $0x78] sm:$0xff] }
 0x6ea   :  { %3739 = vmatprep.subr.mxu1 %v3961_v0 }
 0x6eb   :  { %3740 = vmatpush3.msra.mxu1 %v4696_v45  ;;  %v2364_v45 = vld [vmem:[%s5225_s8 + $0x70] sm:$0xff] }
 0x6ec   :  { %3741 = vmatprep.subr.mxu1 %v3961_v0 }
 0x6ed   :  { %3742 = vmatpush3.msra.mxu1 %v4702_v46  ;;  %v2363_v46 = vld [vmem:[%s5225_s8 + $0x68] sm:$0xff] }
 0x6ee   :  { %3743 = vmatprep.subr.mxu1 %v3961_v0 }
 0x6ef   :  { %3744 = vmatpush3.msra.mxu1 %v4706_v47  ;;  %v2091_v47 = vld [vmem:[#allocation7 + $0x78] sm:$0xff] }
 0x6f0   :  { %3745 = vmatprep.subr.mxu1 %v3961_v0  ;;  %3703 = vmatpush3.msra.mxu0 %v2091_v47 }
 0x6f1   :  { %3746 = vmatpush3.msra.mxu1 %v4710_v50  ;;  %v2090_v50 = vld [vmem:[#allocation7 + $0x70] sm:$0xff]  ;;  %3704 = vmatprep.subr.mxu0 %v3961_v0 }
 0x6f2   :  { %3747 = vmatprep.subr.mxu1 %v3961_v0  ;;  %3705 = vmatpush3.msra.mxu0 %v2090_v50 }
 0x6f3   :  { %3748 = vmatpush3.msra.mxu1 %v4714_v51  ;;  %v2362_v51 = vld [vmem:[%s5225_s8 + $0x60] sm:$0xff]  ;;  %3706 = vmatprep.subr.mxu0 %v3961_v0 }
 0x6f4   :  { %3749 = vmatprep.subr.mxu1 %v3961_v0 }
 0x6f5   :  { %3750 = vmatpush3.msra.mxu1 %v4718_v54  ;;  %v2089_v54 = vld [vmem:[#allocation7 + $0x68] sm:$0xff] }
 0x6f6   :  { %3751 = vmatprep.subr.mxu1 %v3961_v0  ;;  %3707 = vmatpush3.msra.mxu0 %v2089_v54 }
 0x6f7   :  { %3752 = vmatpush3.msra.mxu1 %v4722_v56  ;;  %v2088_v56 = vld [vmem:[#allocation7 + $0x60] sm:$0xff]  ;;  %3708 = vmatprep.subr.mxu0 %v3961_v0 }
 0x6f8   :  { %3753 = vmatprep.subr.mxu1 %v3961_v0  ;;  %3709 = vmatpush3.msra.mxu0 %v2088_v56 }
 0x6f9   :  { %3754 = vmatpush3.msra.mxu1 %v4726_v58  ;;  %v2360_v58 = vld [vmem:[%s5225_s8 + $0x50] sm:$0xff]  ;;  %3710 = vmatprep.subr.mxu0 %v3961_v0 }
 0x6fa   :  { %3755 = vmatprep.subr.mxu1 %v3961_v0 }
 0x6fb   :  { %3756 = vmatpush3.msra.mxu1 %v4730_v59  ;;  %v2087_v59 = vld [vmem:[#allocation7 + $0x58] sm:$0xff] }
 0x6fc   :  { %3757 = vmatprep.subr.mxu1 %v3961_v0  ;;  %3711 = vmatpush3.msra.mxu0 %v2087_v59 }
 0x6fd   :  { %3758 = vmatpush3.msra.mxu1 %v4734_v60  ;;  %v2359_v60 = vld [vmem:[%s5225_s8 + $0x48] sm:$0xff]  ;;  %3712 = vmatprep.subr.mxu0 %v3961_v0 }
 0x6fe   :  { %3759 = vmatprep.subr.mxu1 %v3961_v0 }
 0x6ff   :  { %3760 = vmatpush3.msra.mxu1 %v4738_v1  ;;  %v2086_v1 = vld [vmem:[#allocation7 + $0x50] sm:$0xff] }
 0x700   :  { %3761 = vmatprep.subr.mxu1 %v3961_v0  ;;  %3713 = vmatpush3.msra.mxu0 %v2086_v1 }
 0x701   :  { %3762 = vmatpush3.msra.mxu1 %v4742_v18  ;;  %v2358_v18 = vld [vmem:[%s5225_s8 + $0x40] sm:$0xff]  ;;  %3714 = vmatprep.subr.mxu0 %v3961_v0 }
 0x702   :  { %3763 = vmatprep.subr.mxu1 %v3961_v0 }
 0x703   :  { %3764 = vmatpush3.msra.mxu1 %v4746_v19  ;;  %v2085_v19 = vld [vmem:[#allocation7 + $0x48] sm:$0xff] }
 0x704   :  { %3765 = vmatprep.subr.mxu1 %v3961_v0  ;;  %3715 = vmatpush3.msra.mxu0 %v2085_v19 }
 0x705   :  { %3766 = vmatpush3.msra.mxu1 %v4750_v20  ;;  %v2357_v20 = vld [vmem:[%s5225_s8 + $0x38] sm:$0xff]  ;;  %3716 = vmatprep.subr.mxu0 %v3961_v0 }
 0x706   :  { %3767 = vmatprep.subr.mxu1 %v3961_v0  ;;  %3717 = vmatpush3.msra.mxu0 %v2084_v39 }
 0x707   :  { %3768 = vmatpush3.msra.mxu1 %v4754_v49  ;;  %v2356_v49 = vld [vmem:[%s5225_s8 + $0x30] sm:$0xff]  ;;  %3718 = vmatprep.subr.mxu0 %v3961_v0 }
 0x708   :  { %3770 = vmatmul.mubr.f32.vlgmr.msra.gmra.mxu1 %v3883_v6  ;;  %3807 = vmatprep.subr.mxu1 %v2365_v44 }
 0x709   :  { %3808 = vmatpush3.msra.mxu1 %v2365_v44  ;;  %3839 = vmatprep.mubr.f32.mxu1 %v4407_v16  ;;  %v2361_v16 = vld [vmem:[%s5225_s8 + $0x58] sm:$0xff] }
 0x70a   :  { %3809 = vmatprep.subr.mxu1 %v2364_v45  ;;  %3719 = vmatpush3.msra.mxu0 %v2083_v40 }
 0x70b   :  { %3810 = vmatpush3.msra.mxu1 %v2364_v45  ;;  %3720 = vmatprep.subr.mxu0 %v3961_v0 }
 0x70c   :  { %3811 = vmatprep.subr.mxu1 %v2363_v46  ;;  %3721 = vmatpush3.msra.mxu0 %v2082_v41 }
 0x70d   :  { %3812 = vmatpush3.msra.mxu1 %v2363_v46  ;;  %3722 = vmatprep.subr.mxu0 %v3961_v0 }
 0x70e   :  { %3813 = vmatprep.subr.mxu1 %v2362_v51  ;;  %3723 = vmatpush3.msra.mxu0 %v2081_v7 }
 0x70f   :  { %3814 = vmatpush3.msra.mxu1 %v2362_v51  ;;  %3724 = vmatprep.subr.mxu0 %v3961_v0 }
 0x710   :  { %3815 = vmatprep.subr.mxu1 %v2361_v16 }
 0x711   :  { %3816 = vmatpush3.msra.mxu1 %v2361_v16 }
 0x712   :  { %3817 = vmatprep.subr.mxu1 %v2360_v58 }
 0x713   :  { %3818 = vmatpush3.msra.mxu1 %v2360_v58 }
 0x714   :  { %3819 = vmatprep.subr.mxu1 %v2359_v60 }
 0x715   :  { %3820 = vmatpush3.msra.mxu1 %v2359_v60 }
 0x716   :  { %3821 = vmatprep.subr.mxu1 %v2358_v18 }
 0x717   :  { %3822 = vmatpush3.msra.mxu1 %v2358_v18 }
 0x718   :  { %3823 = vmatprep.subr.mxu1 %v2357_v20 }
 0x719   :  { %3824 = vmatpush3.msra.mxu1 %v2357_v20 }
 0x71a   :  { %3825 = vmatprep.subr.mxu1 %v2356_v49 }
 0x71b   :  { %3826 = vmatpush3.msra.mxu1 %v2356_v49 }
 0x71c   :  { %3827 = vmatprep.subr.mxu1 %v2355_v38 }
 0x71d   :  { %3828 = vmatpush3.msra.mxu1 %v2355_v38 }
 0x71e   :  { %3829 = vmatprep.subr.mxu1 %v2354_v48 }
 0x71f   :  { %3830 = vmatpush3.msra.mxu1 %v2354_v48 }
 0x720   :  { %3831 = vmatprep.subr.mxu1 %v2353_v2 }
 0x721   :  { %3832 = vmatpush3.msra.mxu1 %v2353_v2 }
 0x722   :  { %3833 = vmatprep.subr.mxu1 %v2352_v13 }
 0x723   :  { %3834 = vmatpush3.msra.mxu1 %v2352_v13 }
 0x724   :  { %3835 = vmatprep.subr.mxu1 %v2351_v14 }
 0x725   :  { %3836 = vmatpush3.msra.mxu1 %v2351_v14 }
 0x726   :  { %3837 = vmatprep.subr.mxu1 %v2350_v15 }
 0x727   :  { %3838 = vmatpush3.msra.mxu1 %v2350_v15 }
 0x728   :  { %3840 = vmatmul.mubr.f32.vlgmr.msra.gmra.mxu1 %v4483_v63  ;;  %v2080_v63 = vld [vmem:[#allocation7 + $0x20] sm:$0xff] }
 0x729   :  { %3842 = vmatprep.mubr.f32.mxu1 %v4655_v17  ;;  %v2079_v17 = vld [vmem:[#allocation7 + $0x18] sm:$0xff]  ;;  %3725 = vmatpush3.msra.mxu0 %v2080_v63 }
 0x72a   :  { %3726 = vmatprep.subr.mxu0 %v3961_v0 }
 0x72b   :  { %3727 = vmatpush3.msra.mxu0 %v2079_v17 }
 0x72c   :  { %3843 = vmatmul.mubr.f32.gmra.mxu1 %v4797_v10  ;;  %v2078_v10 = vld [vmem:[#allocation7 + $0x10] sm:$0xff]  ;;  %3728 = vmatprep.subr.mxu0 %v3961_v0 }
 0x72d   :  { %3845 = vmatprep.mubr.f32.mxu1 %v4940_v29  ;;  %3729 = vmatpush3.msra.mxu0 %v2078_v10  ;;  %v2262_v29 = vld [vmem:[#allocation5 + $0x60] sm:$0xff] }
 0x72e   :  { %3730 = vmatprep.subr.mxu0 %v3961_v0 }
 0x72f   :  { %3731 = vmatpush3.msra.mxu0 %v2077_v4 }
 0x730   :  { %3846 = vmatmul.mubr.f32.gmra.mxu1 %v5021_v11  ;;  %3732 = vmatprep.subr.mxu0 %v3961_v0  ;;  %v2252_v11 = vld [vmem:[#allocation5 + $0x10] sm:$0xff] }
 0x731   :  { %3733 = vmatpush3.msra.mxu0 %v2076_v42 }
 0x732   :  { %3772 = vmatprep.subr.mxu0 %v3961_v0 }
 0x788   :  { %v1895_v43 = vpop.f32.mrf.mxu1 }
 0x78a   :  { %v3631_v52 = vpop.f32.mrf.mxu1 }
 0x7a8   :  { %v2069_v53 = vpop.f32.mrf.mxu1 }
 0x7a9   :  { %v2070_v55 = vadd.f32 %v2069_v53, %v1895_v43 }
 0x7aa   :  { %v3701_v22 = vpop.f32.mrf.mxu1 }
 0x7ab   :  { %v2073_v23 = vadd.f32 %v4937_v27, %v2070_v55 }
 0x7ad   :  { %3884 = vtanh.f32 %v2073_v23 }
 0x7ba   :  { %v3885_v25 = vpop.eup %3884 }
 0x7bb   :  { %3735 = vmatmul.mubr.f32.vlgmr.msra.gmra.mxu0 %v3885_v25  ;;  %3848 = vmatprep.mubr.f32.mxu1 %v3885_v25 }
 0x7bc   :  { %3773 = vmatpush3.msra.mxu0 %v2265_v24  ;;  %3804 = vmatprep.mubr.msk.f32.mxu0 %vm3962_vm0, %v3961_v0 }
 0x7bd   :  { %3774 = vmatprep.subr.mxu0 %v3961_v0 }
 0x7be   :  { %3775 = vmatpush3.msra.mxu0 %v2264_v26 }
 0x7bf   :  { %3776 = vmatprep.subr.mxu0 %v3961_v0 }
 0x7c0   :  { %3777 = vmatpush3.msra.mxu0 %v2263_v28 }
 0x7c1   :  { %3778 = vmatprep.subr.mxu0 %v3961_v0 }
 0x7c2   :  { %3779 = vmatpush3.msra.mxu0 %v2262_v29 }
 0x7c3   :  { %3780 = vmatprep.subr.mxu0 %v3961_v0 }
 0x7c4   :  { %3781 = vmatpush3.msra.mxu0 %v2261_v31 }
 0x7c5   :  { %3782 = vmatprep.subr.mxu0 %v3961_v0 }
 0x7c6   :  { %3783 = vmatpush3.msra.mxu0 %v2260_v32 }
 0x7c7   :  { %3784 = vmatprep.subr.mxu0 %v3961_v0 }
 0x7c8   :  { %3785 = vmatpush3.msra.mxu0 %v2259_v33  ;;  %v2244_v35 = vpop.f32.mrf.mxu1 }
 0x7c9   :  { %v2248_v36 = vadd.f32 %v2244_v35, %v222_v34  ;;  %3786 = vmatprep.subr.mxu0 %v3961_v0 }
 0x7ca   :  { %3787 = vmatpush3.msra.mxu0 %v2258_v3  ;;  %v3771_v57 = vpop.f32.mrf.mxu1 }
 0x7cb   :  { %3886 = vtanh.f32 %v2248_v36  ;;  %3788 = vmatprep.subr.mxu0 %v3961_v0 }
 0x7cc   :  { %3789 = vmatpush3.msra.mxu0 %v2257_v37 }
 0x7cd   :  { %3790 = vmatprep.subr.mxu0 %v3961_v0 }
 0x7ce   :  { %3791 = vmatpush3.msra.mxu0 %v2256_v61 }
 0x7cf   :  { %3792 = vmatprep.subr.mxu0 %v3961_v0 }
 0x7d0   :  { %3793 = vmatpush3.msra.mxu0 %v2255_v62 }
 0x7d1   :  { %3794 = vmatprep.subr.mxu0 %v3961_v0 }
 0x7d2   :  { %3795 = vmatpush3.msra.mxu0 %v2254_v5 }
 0x7d3   :  { %3796 = vmatprep.subr.mxu0 %v3961_v0 }
 0x7d4   :  { %3797 = vmatpush3.msra.mxu0 %v2253_v30 }
 0x7d5   :  { %3798 = vmatprep.subr.mxu0 %v3961_v0 }
 0x7d6   :  { %3799 = vmatpush3.msra.mxu0 %v2252_v11 }
 0x7d7   :  { %3800 = vmatprep.subr.mxu0 %v3961_v0 }
 0x7d8   :  { %v3887_v21 = vpop.eup %3886  ;;  %3801 = vmatpush3.msra.mxu0 %v2251_v9 }
 0x7d9   :  { %2339 = vst [vmem:[%s5228_s11] sm:$0xff] %v3887_v21  ;;  %3802 = vmatprep.subr.mxu0 %v3961_v0 }
 0x7da   :  { %3803 = vmatpush3.msra.mxu0 %v2250_v12 }
 0x7db   :  { %3805 = vmatmul.mubr.f32.vlgmr.msra.gmra.mxu0 %v3887_v21 }
 0x7e8   :  { %v3841_v6 = vpop.f32.mrf.mxu1 }
 0x7e9   :  { %v2445_v44 = vadd.f32 %v3841_v6, %v2508_v8 }
 0x7ea   :  { %v2439_v45 = vpop.f32.mrf.mxu1 }
 0x7eb   :  { %2479 = vst [vmem:[%s5227_s10 + $0x8] sm:$0xff] %v2445_v44  ;;  %v2440_v46 = vadd.f32 %v2508_v8, %v2439_v45 }
 0x7ec   :  { %v3844_v47 = vpop.f32.mrf.mxu1 }
 0x7ed   :  { %2478 = vst [vmem:[%s5227_s10] sm:$0xff] %v2440_v46  ;;  %v2455_v0 = vadd.f32 %v3844_v47, %v2508_v8 }
 0x7ee   :  { %v2449_v50 = vpop.f32.mrf.mxu1 }
 0x7ef   :  { %2481 = vst [vmem:[%s5227_s10 + $0x18] sm:$0xff] %v2455_v0  ;;  %v2450_v51 = vadd.f32 %v2508_v8, %v2449_v50 }
 0x7f0   :  { %v3847_v54 = vpop.f32.mrf.mxu1 }
 0x7f1   :  { %2480 = vst [vmem:[%s5227_s10 + $0x10] sm:$0xff] %v2450_v51  ;;  %v2465_v16 = vadd.f32 %v3847_v54, %v2508_v8 }
 0x7f2   :  { %v2459_v56 = vpop.f32.mrf.mxu1 }
 0x7f3   :  { %2483 = vst [vmem:[%s5227_s10 + $0x28] sm:$0xff] %v2465_v16  ;;  %v2460_v58 = vadd.f32 %v2508_v8, %v2459_v56 }
 0x7f5   :  { %2482 = vst [vmem:[%s5227_s10 + $0x20] sm:$0xff] %v2460_v58 }
 0x87b   :  { %v2158_v59 = vpop.f32.mrf.mxu0 }
 0x87d   :  { %v3736_v60 = vpop.f32.mrf.mxu0 }
 0x89b   :  { %v2332_v1 = vpop.f32.mrf.mxu0 }
 0x89c   :  { %v2333_v18 = vadd.f32 %v2332_v1, %v2158_v59 }
 0x89d   :  { %v3806_v19 = vpop.f32.mrf.mxu0 }
 0x89e   :  { %v2336_v20 = vadd.f32 %v4937_v27, %v2333_v18 }
 0x8a0   :  { %3888 = vtanh.f32 %v2336_v20 }
 0x8ad   :  { %v3889_v49 = vpop.eup %3888 }
 0x8ae   :  { %2507 = vst [vmem:[%s5228_s11 + $0x8] sm:$0xff] %v3889_v49  ;;  %3849 = vmatmul.mubr.f32.gmra.mxu1 %v3889_v49 }
 0x96e   :  { %v3850_v38 = vpop.f32.mrf.mxu1 }
 0x96f   :  { %v2475_v48 = vadd.f32 %v3850_v38, %v2508_v8 }
 0x970   :  { %v2469_v2 = vpop.f32.mrf.mxu1 }
 0x971   :  { %2485 = vst [vmem:[%s5227_s10 + $0x38] sm:$0xff] %v2475_v48  ;;  %v2470_v13 = vadd.f32 %v2508_v8, %v2469_v2 }
 0x973   :  { %2484 = vst [vmem:[%s5227_s10 + $0x30] sm:$0xff] %v2470_v13 }
 0x974   :  { %2494 = vsyncpa [#allocation4], 1 }
 0x975   :  { %2495 = vsyncpa [#allocation6], 1 }

</bundles_post_ra>
